<compile_context>
chip_gen: v5e
topology: v5e:2x2
jax: 0.10.0
libtpu: 0.0.40
codegen_flags: <defaults>
</compile_context>

<pallas_src>
import numpy as np
import jax
import jax.numpy as jnp
from jax.experimental import pallas as pl
from jax.experimental.pallas import tpu as pltpu


def _make_conv_kernel(w: int, p: int):
    """Kernel for one (TB, 2*p*w) block of row-pair-packed input rows.

    Packed input row layout (lanes): [e_0 | o_0 | e_1 | o_1 | ... | o_{p-1}]
    where e_j / o_j are the even / odd image rows of row-pair j (w lanes each).
    Outputs: g0 / g1 packed rows of p*(w//2) lanes, output row-pair j at
    lanes [j*w//2, (j+1)*w//2).
    """
    wo = w // 2

    def kernel(x_ref, g0_ref, g1_ref):
        x = x_ref[...]                          # (TB, 2*p*w)
        tb, lanes = x.shape
        # Single column-parity deinterleave of the whole block (the only
        # cross-lane shuffle in the kernel).
        x3 = x.reshape(tb, lanes // 2, 2)
        ec = x3[:, :, 0]                        # even image columns, (TB, p*w)
        oc = x3[:, :, 1]                        # odd image columns,  (TB, p*w)
        # After the deinterleave, segment s (width wo) of ec/oc holds the
        # even/odd columns of packed sub-row s.  Sub-row 2j = e_j, 2j+1 = o_j.
        for j in range(p):                      # static, unrolled (p is small)
            lo = j * w                          # e_j columns start
            mid = lo + wo                       # o_j columns start
            hi = lo + w
            # g0 = e[2c] + e[2c+1] + o[2c]   (weight [[1,1],[1,0]])
            g0_ref[:, j * wo:(j + 1) * wo] = (
                ec[:, lo:mid] + oc[:, lo:mid] + ec[:, mid:hi])
            # g1 = o[2c+1]                    (weight [[0,0],[0,1]])
            g1_ref[:, j * wo:(j + 1) * wo] = oc[:, mid:hi]

    return kernel


def _pick_pack_factor(total_rows: int, wo: int) -> int:
    """Row-pairs packed per kernel row so each output row is >= 128 lanes."""
    p = 1
    while p * wo < 128 and total_rows % (4 * p) == 0:
        p *= 2
    return p


def _pick_block_rows(r2: int, row_bytes: int, align: int,
                     target_bytes: int = 8 * 1024 * 1024,
                     min_grid: int = 4) -> int:
    """Packed rows per grid step: ~target_bytes of input, aligned, and small
    enough to keep >= min_grid grid steps when the array allows it."""
    tb = max(1, target_bytes // max(1, row_bytes))
    if r2 >= min_grid * align:
        tb = min(tb, r2 // min_grid)        # keep grid >= min_grid (megacore)
    if tb >= r2:
        return r2                           # full-extent block is always legal
    tb = (tb // align) * align
    if tb < align:
        tb = align
    return r2 if tb >= r2 else tb


def conv2x2_stride2_pair(x, block_rows=None):
    """x: (N, 1, H, W) -> (g0, g1), each (N, 1, H//2, W//2). Preferred entry
    point for pre-batched callers (no list concat / per-item slicing)."""
    n, c, h, w = x.shape
    assert c == 1 and h % 2 == 0 and w % 2 == 0
    ho, wo = h // 2, w // 2
    total_rows = n * h
    itemsize = jnp.dtype(x.dtype).itemsize
    # Sublane alignment of the block's second-minor dim: f32 -> 8, bf16 -> 16,
    # int8/fp8 -> 32 (keeps packed stores unmasked for narrow dtypes).
    align = max(8, 8 * (4 // itemsize))

    p = _pick_pack_factor(total_rows, wo)
    r2 = total_rows // (2 * p)              # packed rows
    lanes_in = 2 * p * w
    lanes_out = p * wo

    xp = x.reshape(r2, lanes_in)            # free contiguous reshape

    row_bytes = lanes_in * itemsize
    if block_rows is None:
        tb = _pick_block_rows(r2, row_bytes, align)
    else:
        tb = min(int(block_rows), r2)
        assert tb == r2 or tb % align == 0
    grid = (pl.cdiv(r2, tb),)

    # VMEM budget: double-buffered input + two double-buffered quarter-size
    # outputs + headroom; clamped so the same tiling is safe on v7x (64 MiB).
    blk_in = tb * lanes_in * itemsize
    blk_out = tb * lanes_out * itemsize
    vmem_limit = int(min(40 * 1024 * 1024,
                         max(16 * 1024 * 1024,
                             2 * blk_in + 4 * blk_out + 4 * 1024 * 1024)))

    g0, g1 = pl.pallas_call(
        _make_conv_kernel(w, p),
        out_shape=(
            jax.ShapeDtypeStruct((r2, lanes_out), x.dtype),
            jax.ShapeDtypeStruct((r2, lanes_out), x.dtype),
        ),
        grid=grid,
        in_specs=[
            pl.BlockSpec((tb, lanes_in), lambda i: (i, 0)),
        ],
        out_specs=(
            pl.BlockSpec((tb, lanes_out), lambda i: (i, 0)),
            pl.BlockSpec((tb, lanes_out), lambda i: (i, 0)),
        ),
        compiler_params=pltpu.CompilerParams(
            dimension_semantics=("parallel",),
            vmem_limit_bytes=vmem_limit,
        ),
    )(xp)

    return g0.reshape(n, 1, ho, wo), g1.reshape(n, 1, ho, wo)


def h_module_optimized_forward(x_list):
    """x_list: list of (array of shape (1, 1, H, W), tag-string) pairs.

    Kept for API parity with the PyTorch module.  The concat below is an
    extra HBM pass inherent to the list interface; batched callers should use
    conv2x2_stride2_pair directly.
    """
    arrays = [m for m, _ in x_list]
    x = arrays[0] if len(arrays) == 1 else jnp.concatenate(arrays, axis=0)
    g0, g1 = conv2x2_stride2_pair(x)
    res = []
    for idx, (_, tag) in enumerate(x_list):
        res.append((g0[idx:idx + 1], '0' + tag))
        res.append((g1[idx:idx + 1], '1' + tag))
    return res


# ----------------------------------------------------------------------------
# Pure-JAX references for verification.
def _reference_conv(x):
    g0 = x[:, :, 0::2, 0::2] + x[:, :, 0::2, 1::2] + x[:, :, 1::2, 0::2]
    g1 = x[:, :, 1::2, 1::2]
    return g0, g1


def _reference_forward(x_list):
    x = jnp.concatenate([m for m, _ in x_list], axis=0)
    g0, g1 = _reference_conv(x)
    res = []
    for idx in range(len(x_list)):
        res.append((g0[idx:idx + 1], '0' + x_list[idx][1]))
        res.append((g1[idx:idx + 1], '1' + x_list[idx][1]))
    return res


if __name__ == "__main__":
    key = jax.random.PRNGKey(0)
    k0, k1, k2, k3 = jax.random.split(key, 4)

    # --- Module-level check: two items, 1 channel, 16x16 spatial (small-W
    #     path: p=16 row-pairs packed per kernel row -> 128-lane outputs).
    x_list = [
        (jax.random.normal(k0, (1, 1, 16, 16), dtype=jnp.float32), "a"),
        (jax.random.normal(k1, (1, 1, 16, 16), dtype=jnp.float32), "b"),
    ]
    out = h_module_optimized_forward(x_list)
    for arr, _tag in out:
        jax.block_until_ready(arr)

    ref = _reference_forward(x_list)
    assert len(out) == len(ref)
    for (a, ta), (r, tr_tag) in zip(out, ref):
        assert ta == tr_tag, (ta, tr_tag)
        assert a.shape == r.shape == (1, 1, 8, 8), a.shape
        np.testing.assert_allclose(np.asarray(a), np.asarray(r),
                                   rtol=1e-6, atol=1e-6)

    # --- Multi-block grid check on the small-W packed path (64 images of
    #     16x16 -> r2=32 packed rows, block_rows=8 -> grid=(4,), parallel).
    xb = jax.random.normal(k2, (64, 1, 16, 16), dtype=jnp.float32)
    g0b, g1b = conv2x2_stride2_pair(xb, block_rows=8)
    jax.block_until_ready(g0b)
    jax.block_until_ready(g1b)
    rg0, rg1 = _reference_conv(xb)
    np.testing.assert_allclose(np.asarray(g0b), np.asarray(rg0),
                               rtol=1e-6, atol=1e-6)
    np.testing.assert_allclose(np.asarray(g1b), np.asarray(rg1),
                               rtol=1e-6, atol=1e-6)

    # --- Large-W path (p=1, lane-dense outputs, auto block sizing -> grid>=4).
    xc = jax.random.normal(k3, (4, 1, 16, 256), dtype=jnp.float32)
    g0c, g1c = conv2x2_stride2_pair(xc)
    jax.block_until_ready(g0c)
    jax.block_until_ready(g1c)
    rg0c, rg1c = _reference_conv(xc)
    np.testing.assert_allclose(np.asarray(g0c), np.asarray(rg0c),
                               rtol=1e-6, atol=1e-6)
    np.testing.assert_allclose(np.asarray(g1c), np.asarray(rg1c),
                               rtol=1e-6, atol=1e-6)

    print("KERNEL_OK")
</pallas_src>

<mosaic_0001>
module attributes {stable_mosaic.version = 11 : i64} {
  func.func @kernel(%arg0: i32, %arg1: memref<1x512xf32, #tpu.memory_space<vmem>>, %arg2: memref<1x128xf32, #tpu.memory_space<vmem>>, %arg3: memref<1x128xf32, #tpu.memory_space<vmem>>) attributes {dimension_semantics = [#tpu.dimension_semantics<parallel>], iteration_bounds = array<i64: 1>, scalar_prefetch = 0 : i64, scratch_operands = 0 : i64, tpu.core_type = #tpu.core_type<tc>, window_params = [{transform_indices = @transform_0, window_bounds = array<i64: 1, 512>}, {transform_indices = @transform_1, window_bounds = array<i64: 1, 128>}, {transform_indices = @transform_2, window_bounds = array<i64: 1, 128>}]} {
    %c0 = arith.constant 0 : index
    %c0_0 = arith.constant 0 : index
    %0 = vector.load %arg1[%c0, %c0_0] : memref<1x512xf32, #tpu.memory_space<vmem>>, vector<1x512xf32>
    %1 = vector.shape_cast %0 : vector<1x512xf32> to vector<1x256x2xf32>
    %2 = vector.extract_strided_slice %1 {offsets = [0, 0, 0], sizes = [1, 256, 1], strides = [1, 1, 1]} : vector<1x256x2xf32> to vector<1x256x1xf32>
    %3 = vector.shape_cast %2 : vector<1x256x1xf32> to vector<1x256xf32>
    %4 = vector.extract_strided_slice %1 {offsets = [0, 0, 1], sizes = [1, 256, 1], strides = [1, 1, 1]} : vector<1x256x2xf32> to vector<1x256x1xf32>
    %5 = vector.shape_cast %4 : vector<1x256x1xf32> to vector<1x256xf32>
    %6 = vector.extract_strided_slice %3 {offsets = [0, 0], sizes = [1, 8], strides = [1, 1]} : vector<1x256xf32> to vector<1x8xf32>
    %7 = vector.extract_strided_slice %5 {offsets = [0, 0], sizes = [1, 8], strides = [1, 1]} : vector<1x256xf32> to vector<1x8xf32>
    %8 = arith.addf %6, %7 : vector<1x8xf32>
    %9 = vector.extract_strided_slice %3 {offsets = [0, 8], sizes = [1, 8], strides = [1, 1]} : vector<1x256xf32> to vector<1x8xf32>
    %10 = arith.addf %8, %9 : vector<1x8xf32>
    %c0_1 = arith.constant 0 : index
    %c0_2 = arith.constant 0 : index
    %11 = vector.load %arg2[%c0_1, %c0_2] : memref<1x128xf32, #tpu.memory_space<vmem>>, vector<1x8xf32>
    tpu.vector_store %arg2[%c0_1, %c0_2], %10 {strides = array<i32>} : memref<1x128xf32, #tpu.memory_space<vmem>>, vector<1x8xf32>,
    %12 = vector.extract_strided_slice %5 {offsets = [0, 8], sizes = [1, 8], strides = [1, 1]} : vector<1x256xf32> to vector<1x8xf32>
    %c0_3 = arith.constant 0 : index
    %c0_4 = arith.constant 0 : index
    %13 = vector.load %arg3[%c0_3, %c0_4] : memref<1x128xf32, #tpu.memory_space<vmem>>, vector<1x8xf32>
    tpu.vector_store %arg3[%c0_3, %c0_4], %12 {strides = array<i32>} : memref<1x128xf32, #tpu.memory_space<vmem>>, vector<1x8xf32>,
    %14 = vector.extract_strided_slice %3 {offsets = [0, 16], sizes = [1, 8], strides = [1, 1]} : vector<1x256xf32> to vector<1x8xf32>
    %15 = vector.extract_strided_slice %5 {offsets = [0, 16], sizes = [1, 8], strides = [1, 1]} : vector<1x256xf32> to vector<1x8xf32>
    %16 = arith.addf %14, %15 : vector<1x8xf32>
    %17 = vector.extract_strided_slice %3 {offsets = [0, 24], sizes = [1, 8], strides = [1, 1]} : vector<1x256xf32> to vector<1x8xf32>
    %18 = arith.addf %16, %17 : vector<1x8xf32>
    %c0_5 = arith.constant 0 : index
    %c8 = arith.constant 8 : index
    %19 = vector.load %arg2[%c0_5, %c8] : memref<1x128xf32, #tpu.memory_space<vmem>>, vector<1x8xf32>
    tpu.vector_store %arg2[%c0_5, %c8], %18 {strides = array<i32>} : memref<1x128xf32, #tpu.memory_space<vmem>>, vector<1x8xf32>,
    %20 = vector.extract_strided_slice %5 {offsets = [0, 24], sizes = [1, 8], strides = [1, 1]} : vector<1x256xf32> to vector<1x8xf32>
    %c0_6 = arith.constant 0 : index
    %c8_7 = arith.constant 8 : index
    %21 = vector.load %arg3[%c0_6, %c8_7] : memref<1x128xf32, #tpu.memory_space<vmem>>, vector<1x8xf32>
    tpu.vector_store %arg3[%c0_6, %c8_7], %20 {strides = array<i32>} : memref<1x128xf32, #tpu.memory_space<vmem>>, vector<1x8xf32>,
    %22 = vector.extract_strided_slice %3 {offsets = [0, 32], sizes = [1, 8], strides = [1, 1]} : vector<1x256xf32> to vector<1x8xf32>
    %23 = vector.extract_strided_slice %5 {offsets = [0, 32], sizes = [1, 8], strides = [1, 1]} : vector<1x256xf32> to vector<1x8xf32>
    %24 = arith.addf %22, %23 : vector<1x8xf32>
    %25 = vector.extract_strided_slice %3 {offsets = [0, 40], sizes = [1, 8], strides = [1, 1]} : vector<1x256xf32> to vector<1x8xf32>
    %26 = arith.addf %24, %25 : vector<1x8xf32>
    %c0_8 = arith.constant 0 : index
    %c16 = arith.constant 16 : index
    %27 = vector.load %arg2[%c0_8, %c16] : memref<1x128xf32, #tpu.memory_space<vmem>>, vector<1x8xf32>
    tpu.vector_store %arg2[%c0_8, %c16], %26 {strides = array<i32>} : memref<1x128xf32, #tpu.memory_space<vmem>>, vector<1x8xf32>,
    %28 = vector.extract_strided_slice %5 {offsets = [0, 40], sizes = [1, 8], strides = [1, 1]} : vector<1x256xf32> to vector<1x8xf32>
    %c0_9 = arith.constant 0 : index
    %c16_10 = arith.constant 16 : index
    %29 = vector.load %arg3[%c0_9, %c16_10] : memref<1x128xf32, #tpu.memory_space<vmem>>, vector<1x8xf32>
    tpu.vector_store %arg3[%c0_9, %c16_10], %28 {strides = array<i32>} : memref<1x128xf32, #tpu.memory_space<vmem>>, vector<1x8xf32>,
    %30 = vector.extract_strided_slice %3 {offsets = [0, 48], sizes = [1, 8], strides = [1, 1]} : vector<1x256xf32> to vector<1x8xf32>
    %31 = vector.extract_strided_slice %5 {offsets = [0, 48], sizes = [1, 8], strides = [1, 1]} : vector<1x256xf32> to vector<1x8xf32>
    %32 = arith.addf %30, %31 : vector<1x8xf32>
    %33 = vector.extract_strided_slice %3 {offsets = [0, 56], sizes = [1, 8], strides = [1, 1]} : vector<1x256xf32> to vector<1x8xf32>
    %34 = arith.addf %32, %33 : vector<1x8xf32>
    %c0_11 = arith.constant 0 : index
    %c24 = arith.constant 24 : index
    %35 = vector.load %arg2[%c0_11, %c24] : memref<1x128xf32, #tpu.memory_space<vmem>>, vector<1x8xf32>
    tpu.vector_store %arg2[%c0_11, %c24], %34 {strides = array<i32>} : memref<1x128xf32, #tpu.memory_space<vmem>>, vector<1x8xf32>,
    %36 = vector.extract_strided_slice %5 {offsets = [0, 56], sizes = [1, 8], strides = [1, 1]} : vector<1x256xf32> to vector<1x8xf32>
    %c0_12 = arith.constant 0 : index
    %c24_13 = arith.constant 24 : index
    %37 = vector.load %arg3[%c0_12, %c24_13] : memref<1x128xf32, #tpu.memory_space<vmem>>, vector<1x8xf32>
    tpu.vector_store %arg3[%c0_12, %c24_13], %36 {strides = array<i32>} : memref<1x128xf32, #tpu.memory_space<vmem>>, vector<1x8xf32>,
    %38 = vector.extract_strided_slice %3 {offsets = [0, 64], sizes = [1, 8], strides = [1, 1]} : vector<1x256xf32> to vector<1x8xf32>
    %39 = vector.extract_strided_slice %5 {offsets = [0, 64], sizes = [1, 8], strides = [1, 1]} : vector<1x256xf32> to vector<1x8xf32>
    %40 = arith.addf %38, %39 : vector<1x8xf32>
    %41 = vector.extract_strided_slice %3 {offsets = [0, 72], sizes = [1, 8], strides = [1, 1]} : vector<1x256xf32> to vector<1x8xf32>
    %42 = arith.addf %40, %41 : vector<1x8xf32>
    %c0_14 = arith.constant 0 : index
    %c32 = arith.constant 32 : index
    %43 = vector.load %arg2[%c0_14, %c32] : memref<1x128xf32, #tpu.memory_space<vmem>>, vector<1x8xf32>
    tpu.vector_store %arg2[%c0_14, %c32], %42 {strides = array<i32>} : memref<1x128xf32, #tpu.memory_space<vmem>>, vector<1x8xf32>,
    %44 = vector.extract_strided_slice %5 {offsets = [0, 72], sizes = [1, 8], strides = [1, 1]} : vector<1x256xf32> to vector<1x8xf32>
    %c0_15 = arith.constant 0 : index
    %c32_16 = arith.constant 32 : index
    %45 = vector.load %arg3[%c0_15, %c32_16] : memref<1x128xf32, #tpu.memory_space<vmem>>, vector<1x8xf32>
    tpu.vector_store %arg3[%c0_15, %c32_16], %44 {strides = array<i32>} : memref<1x128xf32, #tpu.memory_space<vmem>>, vector<1x8xf32>,
    %46 = vector.extract_strided_slice %3 {offsets = [0, 80], sizes = [1, 8], strides = [1, 1]} : vector<1x256xf32> to vector<1x8xf32>
    %47 = vector.extract_strided_slice %5 {offsets = [0, 80], sizes = [1, 8], strides = [1, 1]} : vector<1x256xf32> to vector<1x8xf32>
    %48 = arith.addf %46, %47 : vector<1x8xf32>
    %49 = vector.extract_strided_slice %3 {offsets = [0, 88], sizes = [1, 8], strides = [1, 1]} : vector<1x256xf32> to vector<1x8xf32>
    %50 = arith.addf %48, %49 : vector<1x8xf32>
    %c0_17 = arith.constant 0 : index
    %c40 = arith.constant 40 : index
    %51 = vector.load %arg2[%c0_17, %c40] : memref<1x128xf32, #tpu.memory_space<vmem>>, vector<1x8xf32>
    tpu.vector_store %arg2[%c0_17, %c40], %50 {strides = array<i32>} : memref<1x128xf32, #tpu.memory_space<vmem>>, vector<1x8xf32>,
    %52 = vector.extract_strided_slice %5 {offsets = [0, 88], sizes = [1, 8], strides = [1, 1]} : vector<1x256xf32> to vector<1x8xf32>
    %c0_18 = arith.constant 0 : index
    %c40_19 = arith.constant 40 : index
    %53 = vector.load %arg3[%c0_18, %c40_19] : memref<1x128xf32, #tpu.memory_space<vmem>>, vector<1x8xf32>
    tpu.vector_store %arg3[%c0_18, %c40_19], %52 {strides = array<i32>} : memref<1x128xf32, #tpu.memory_space<vmem>>, vector<1x8xf32>,
    %54 = vector.extract_strided_slice %3 {offsets = [0, 96], sizes = [1, 8], strides = [1, 1]} : vector<1x256xf32> to vector<1x8xf32>
    %55 = vector.extract_strided_slice %5 {offsets = [0, 96], sizes = [1, 8], strides = [1, 1]} : vector<1x256xf32> to vector<1x8xf32>
    %56 = arith.addf %54, %55 : vector<1x8xf32>
    %57 = vector.extract_strided_slice %3 {offsets = [0, 104], sizes = [1, 8], strides = [1, 1]} : vector<1x256xf32> to vector<1x8xf32>
    %58 = arith.addf %56, %57 : vector<1x8xf32>
    %c0_20 = arith.constant 0 : index
    %c48 = arith.constant 48 : index
    %59 = vector.load %arg2[%c0_20, %c48] : memref<1x128xf32, #tpu.memory_space<vmem>>, vector<1x8xf32>
    tpu.vector_store %arg2[%c0_20, %c48], %58 {strides = array<i32>} : memref<1x128xf32, #tpu.memory_space<vmem>>, vector<1x8xf32>,
    %60 = vector.extract_strided_slice %5 {offsets = [0, 104], sizes = [1, 8], strides = [1, 1]} : vector<1x256xf32> to vector<1x8xf32>
    %c0_21 = arith.constant 0 : index
    %c48_22 = arith.constant 48 : index
    %61 = vector.load %arg3[%c0_21, %c48_22] : memref<1x128xf32, #tpu.memory_space<vmem>>, vector<1x8xf32>
    tpu.vector_store %arg3[%c0_21, %c48_22], %60 {strides = array<i32>} : memref<1x128xf32, #tpu.memory_space<vmem>>, vector<1x8xf32>,
    %62 = vector.extract_strided_slice %3 {offsets = [0, 112], sizes = [1, 8], strides = [1, 1]} : vector<1x256xf32> to vector<1x8xf32>
    %63 = vector.extract_strided_slice %5 {offsets = [0, 112], sizes = [1, 8], strides = [1, 1]} : vector<1x256xf32> to vector<1x8xf32>
    %64 = arith.addf %62, %63 : vector<1x8xf32>
    %65 = vector.extract_strided_slice %3 {offsets = [0, 120], sizes = [1, 8], strides = [1, 1]} : vector<1x256xf32> to vector<1x8xf32>
    %66 = arith.addf %64, %65 : vector<1x8xf32>
    %c0_23 = arith.constant 0 : index
    %c56 = arith.constant 56 : index
    %67 = vector.load %arg2[%c0_23, %c56] : memref<1x128xf32, #tpu.memory_space<vmem>>, vector<1x8xf32>
    tpu.vector_store %arg2[%c0_23, %c56], %66 {strides = array<i32>} : memref<1x128xf32, #tpu.memory_space<vmem>>, vector<1x8xf32>,
    %68 = vector.extract_strided_slice %5 {offsets = [0, 120], sizes = [1, 8], strides = [1, 1]} : vector<1x256xf32> to vector<1x8xf32>
    %c0_24 = arith.constant 0 : index
    %c56_25 = arith.constant 56 : index
    %69 = vector.load %arg3[%c0_24, %c56_25] : memref<1x128xf32, #tpu.memory_space<vmem>>, vector<1x8xf32>
    tpu.vector_store %arg3[%c0_24, %c56_25], %68 {strides = array<i32>} : memref<1x128xf32, #tpu.memory_space<vmem>>, vector<1x8xf32>,
    %70 = vector.extract_strided_slice %3 {offsets = [0, 128], sizes = [1, 8], strides = [1, 1]} : vector<1x256xf32> to vector<1x8xf32>
    %71 = vector.extract_strided_slice %5 {offsets = [0, 128], sizes = [1, 8], strides = [1, 1]} : vector<1x256xf32> to vector<1x8xf32>
    %72 = arith.addf %70, %71 : vector<1x8xf32>
    %73 = vector.extract_strided_slice %3 {offsets = [0, 136], sizes = [1, 8], strides = [1, 1]} : vector<1x256xf32> to vector<1x8xf32>
    %74 = arith.addf %72, %73 : vector<1x8xf32>
    %c0_26 = arith.constant 0 : index
    %c64 = arith.constant 64 : index
    %75 = vector.load %arg2[%c0_26, %c64] : memref<1x128xf32, #tpu.memory_space<vmem>>, vector<1x8xf32>
    tpu.vector_store %arg2[%c0_26, %c64], %74 {strides = array<i32>} : memref<1x128xf32, #tpu.memory_space<vmem>>, vector<1x8xf32>,
    %76 = vector.extract_strided_slice %5 {offsets = [0, 136], sizes = [1, 8], strides = [1, 1]} : vector<1x256xf32> to vector<1x8xf32>
    %c0_27 = arith.constant 0 : index
    %c64_28 = arith.constant 64 : index
    %77 = vector.load %arg3[%c0_27, %c64_28] : memref<1x128xf32, #tpu.memory_space<vmem>>, vector<1x8xf32>
    tpu.vector_store %arg3[%c0_27, %c64_28], %76 {strides = array<i32>} : memref<1x128xf32, #tpu.memory_space<vmem>>, vector<1x8xf32>,
    %78 = vector.extract_strided_slice %3 {offsets = [0, 144], sizes = [1, 8], strides = [1, 1]} : vector<1x256xf32> to vector<1x8xf32>
    %79 = vector.extract_strided_slice %5 {offsets = [0, 144], sizes = [1, 8], strides = [1, 1]} : vector<1x256xf32> to vector<1x8xf32>
    %80 = arith.addf %78, %79 : vector<1x8xf32>
    %81 = vector.extract_strided_slice %3 {offsets = [0, 152], sizes = [1, 8], strides = [1, 1]} : vector<1x256xf32> to vector<1x8xf32>
    %82 = arith.addf %80, %81 : vector<1x8xf32>
    %c0_29 = arith.constant 0 : index
    %c72 = arith.constant 72 : index
    %83 = vector.load %arg2[%c0_29, %c72] : memref<1x128xf32, #tpu.memory_space<vmem>>, vector<1x8xf32>
    tpu.vector_store %arg2[%c0_29, %c72], %82 {strides = array<i32>} : memref<1x128xf32, #tpu.memory_space<vmem>>, vector<1x8xf32>,
    %84 = vector.extract_strided_slice %5 {offsets = [0, 152], sizes = [1, 8], strides = [1, 1]} : vector<1x256xf32> to vector<1x8xf32>
    %c0_30 = arith.constant 0 : index
    %c72_31 = arith.constant 72 : index
    %85 = vector.load %arg3[%c0_30, %c72_31] : memref<1x128xf32, #tpu.memory_space<vmem>>, vector<1x8xf32>
    tpu.vector_store %arg3[%c0_30, %c72_31], %84 {strides = array<i32>} : memref<1x128xf32, #tpu.memory_space<vmem>>, vector<1x8xf32>,
    %86 = vector.extract_strided_slice %3 {offsets = [0, 160], sizes = [1, 8], strides = [1, 1]} : vector<1x256xf32> to vector<1x8xf32>
    %87 = vector.extract_strided_slice %5 {offsets = [0, 160], sizes = [1, 8], strides = [1, 1]} : vector<1x256xf32> to vector<1x8xf32>
    %88 = arith.addf %86, %87 : vector<1x8xf32>
    %89 = vector.extract_strided_slice %3 {offsets = [0, 168], sizes = [1, 8], strides = [1, 1]} : vector<1x256xf32> to vector<1x8xf32>
    %90 = arith.addf %88, %89 : vector<1x8xf32>
    %c0_32 = arith.constant 0 : index
    %c80 = arith.constant 80 : index
    %91 = vector.load %arg2[%c0_32, %c80] : memref<1x128xf32, #tpu.memory_space<vmem>>, vector<1x8xf32>
    tpu.vector_store %arg2[%c0_32, %c80], %90 {strides = array<i32>} : memref<1x128xf32, #tpu.memory_space<vmem>>, vector<1x8xf32>,
    %92 = vector.extract_strided_slice %5 {offsets = [0, 168], sizes = [1, 8], strides = [1, 1]} : vector<1x256xf32> to vector<1x8xf32>
    %c0_33 = arith.constant 0 : index
    %c80_34 = arith.constant 80 : index
    %93 = vector.load %arg3[%c0_33, %c80_34] : memref<1x128xf32, #tpu.memory_space<vmem>>, vector<1x8xf32>
    tpu.vector_store %arg3[%c0_33, %c80_34], %92 {strides = array<i32>} : memref<1x128xf32, #tpu.memory_space<vmem>>, vector<1x8xf32>,
    %94 = vector.extract_strided_slice %3 {offsets = [0, 176], sizes = [1, 8], strides = [1, 1]} : vector<1x256xf32> to vector<1x8xf32>
    %95 = vector.extract_strided_slice %5 {offsets = [0, 176], sizes = [1, 8], strides = [1, 1]} : vector<1x256xf32> to vector<1x8xf32>
    %96 = arith.addf %94, %95 : vector<1x8xf32>
    %97 = vector.extract_strided_slice %3 {offsets = [0, 184], sizes = [1, 8], strides = [1, 1]} : vector<1x256xf32> to vector<1x8xf32>
    %98 = arith.addf %96, %97 : vector<1x8xf32>
    %c0_35 = arith.constant 0 : index
    %c88 = arith.constant 88 : index
    %99 = vector.load %arg2[%c0_35, %c88] : memref<1x128xf32, #tpu.memory_space<vmem>>, vector<1x8xf32>
    tpu.vector_store %arg2[%c0_35, %c88], %98 {strides = array<i32>} : memref<1x128xf32, #tpu.memory_space<vmem>>, vector<1x8xf32>,
    %100 = vector.extract_strided_slice %5 {offsets = [0, 184], sizes = [1, 8], strides = [1, 1]} : vector<1x256xf32> to vector<1x8xf32>
    %c0_36 = arith.constant 0 : index
    %c88_37 = arith.constant 88 : index
    %101 = vector.load %arg3[%c0_36, %c88_37] : memref<1x128xf32, #tpu.memory_space<vmem>>, vector<1x8xf32>
    tpu.vector_store %arg3[%c0_36, %c88_37], %100 {strides = array<i32>} : memref<1x128xf32, #tpu.memory_space<vmem>>, vector<1x8xf32>,
    %102 = vector.extract_strided_slice %3 {offsets = [0, 192], sizes = [1, 8], strides = [1, 1]} : vector<1x256xf32> to vector<1x8xf32>
    %103 = vector.extract_strided_slice %5 {offsets = [0, 192], sizes = [1, 8], strides = [1, 1]} : vector<1x256xf32> to vector<1x8xf32>
    %104 = arith.addf %102, %103 : vector<1x8xf32>
    %105 = vector.extract_strided_slice %3 {offsets = [0, 200], sizes = [1, 8], strides = [1, 1]} : vector<1x256xf32> to vector<1x8xf32>
    %106 = arith.addf %104, %105 : vector<1x8xf32>
    %c0_38 = arith.constant 0 : index
    %c96 = arith.constant 96 : index
    %107 = vector.load %arg2[%c0_38, %c96] : memref<1x128xf32, #tpu.memory_space<vmem>>, vector<1x8xf32>
    tpu.vector_store %arg2[%c0_38, %c96], %106 {strides = array<i32>} : memref<1x128xf32, #tpu.memory_space<vmem>>, vector<1x8xf32>,
    %108 = vector.extract_strided_slice %5 {offsets = [0, 200], sizes = [1, 8], strides = [1, 1]} : vector<1x256xf32> to vector<1x8xf32>
    %c0_39 = arith.constant 0 : index
    %c96_40 = arith.constant 96 : index
    %109 = vector.load %arg3[%c0_39, %c96_40] : memref<1x128xf32, #tpu.memory_space<vmem>>, vector<1x8xf32>
    tpu.vector_store %arg3[%c0_39, %c96_40], %108 {strides = array<i32>} : memref<1x128xf32, #tpu.memory_space<vmem>>, vector<1x8xf32>,
    %110 = vector.extract_strided_slice %3 {offsets = [0, 208], sizes = [1, 8], strides = [1, 1]} : vector<1x256xf32> to vector<1x8xf32>
    %111 = vector.extract_strided_slice %5 {offsets = [0, 208], sizes = [1, 8], strides = [1, 1]} : vector<1x256xf32> to vector<1x8xf32>
    %112 = arith.addf %110, %111 : vector<1x8xf32>
    %113 = vector.extract_strided_slice %3 {offsets = [0, 216], sizes = [1, 8], strides = [1, 1]} : vector<1x256xf32> to vector<1x8xf32>
    %114 = arith.addf %112, %113 : vector<1x8xf32>
    %c0_41 = arith.constant 0 : index
    %c104 = arith.constant 104 : index
    %115 = vector.load %arg2[%c0_41, %c104] : memref<1x128xf32, #tpu.memory_space<vmem>>, vector<1x8xf32>
    tpu.vector_store %arg2[%c0_41, %c104], %114 {strides = array<i32>} : memref<1x128xf32, #tpu.memory_space<vmem>>, vector<1x8xf32>,
    %116 = vector.extract_strided_slice %5 {offsets = [0, 216], sizes = [1, 8], strides = [1, 1]} : vector<1x256xf32> to vector<1x8xf32>
    %c0_42 = arith.constant 0 : index
    %c104_43 = arith.constant 104 : index
    %117 = vector.load %arg3[%c0_42, %c104_43] : memref<1x128xf32, #tpu.memory_space<vmem>>, vector<1x8xf32>
    tpu.vector_store %arg3[%c0_42, %c104_43], %116 {strides = array<i32>} : memref<1x128xf32, #tpu.memory_space<vmem>>, vector<1x8xf32>,
    %118 = vector.extract_strided_slice %3 {offsets = [0, 224], sizes = [1, 8], strides = [1, 1]} : vector<1x256xf32> to vector<1x8xf32>
    %119 = vector.extract_strided_slice %5 {offsets = [0, 224], sizes = [1, 8], strides = [1, 1]} : vector<1x256xf32> to vector<1x8xf32>
    %120 = arith.addf %118, %119 : vector<1x8xf32>
    %121 = vector.extract_strided_slice %3 {offsets = [0, 232], sizes = [1, 8], strides = [1, 1]} : vector<1x256xf32> to vector<1x8xf32>
    %122 = arith.addf %120, %121 : vector<1x8xf32>
    %c0_44 = arith.constant 0 : index
    %c112 = arith.constant 112 : index
    %123 = vector.load %arg2[%c0_44, %c112] : memref<1x128xf32, #tpu.memory_space<vmem>>, vector<1x8xf32>
    tpu.vector_store %arg2[%c0_44, %c112], %122 {strides = array<i32>} : memref<1x128xf32, #tpu.memory_space<vmem>>, vector<1x8xf32>,
    %124 = vector.extract_strided_slice %5 {offsets = [0, 232], sizes = [1, 8], strides = [1, 1]} : vector<1x256xf32> to vector<1x8xf32>
    %c0_45 = arith.constant 0 : index
    %c112_46 = arith.constant 112 : index
    %125 = vector.load %arg3[%c0_45, %c112_46] : memref<1x128xf32, #tpu.memory_space<vmem>>, vector<1x8xf32>
    tpu.vector_store %arg3[%c0_45, %c112_46], %124 {strides = array<i32>} : memref<1x128xf32, #tpu.memory_space<vmem>>, vector<1x8xf32>,
    %126 = vector.extract_strided_slice %3 {offsets = [0, 240], sizes = [1, 8], strides = [1, 1]} : vector<1x256xf32> to vector<1x8xf32>
    %127 = vector.extract_strided_slice %5 {offsets = [0, 240], sizes = [1, 8], strides = [1, 1]} : vector<1x256xf32> to vector<1x8xf32>
    %128 = arith.addf %126, %127 : vector<1x8xf32>
    %129 = vector.extract_strided_slice %3 {offsets = [0, 248], sizes = [1, 8], strides = [1, 1]} : vector<1x256xf32> to vector<1x8xf32>
    %130 = arith.addf %128, %129 : vector<1x8xf32>
    %c0_47 = arith.constant 0 : index
    %c120 = arith.constant 120 : index
    %131 = vector.load %arg2[%c0_47, %c120] : memref<1x128xf32, #tpu.memory_space<vmem>>, vector<1x8xf32>
    tpu.vector_store %arg2[%c0_47, %c120], %130 {strides = array<i32>} : memref<1x128xf32, #tpu.memory_space<vmem>>, vector<1x8xf32>,
    %132 = vector.extract_strided_slice %5 {offsets = [0, 248], sizes = [1, 8], strides = [1, 1]} : vector<1x256xf32> to vector<1x8xf32>
    %c0_48 = arith.constant 0 : index
    %c120_49 = arith.constant 120 : index
    %133 = vector.load %arg3[%c0_48, %c120_49] : memref<1x128xf32, #tpu.memory_space<vmem>>, vector<1x8xf32>
    tpu.vector_store %arg3[%c0_48, %c120_49], %132 {strides = array<i32>} : memref<1x128xf32, #tpu.memory_space<vmem>>, vector<1x8xf32>,
    return
  }
  func.func @transform_0(%arg0: i32) -> (i32, i32) {
    %c0_i32 = arith.constant 0 : i32
    %c0_i32_0 = arith.constant 0 : i32
    return %arg0, %c0_i32 : i32, i32
  }
  func.func @transform_1(%arg0: i32) -> (i32, i32) {
    %c0_i32 = arith.constant 0 : i32
    %c0_i32_0 = arith.constant 0 : i32
    return %arg0, %c0_i32 : i32, i32
  }
  func.func @transform_2(%arg0: i32) -> (i32, i32) {
    %c0_i32 = arith.constant 0 : i32
    %c0_i32_0 = arith.constant 0 : i32
    return %arg0, %c0_i32 : i32, i32
  }
}

</mosaic_0001>

<bundles_post_ra>
// kernel: tpu_custom_call.1
= control target key start
LH: loop header
LB: loop body
LE: loop exit
PB: predicated region body
PF: predicated region fallthrough
CT: control target
= control target key end

     0   :  { %8 = vsyncpa [#allocation3], 0  ;;  %s3457_s0 = inlined_call_operand.hbm [shape: f32[1,512], index: 0, kind: input, shape index: {}]   ;;  %s3458_s1 = inlined_call_operand.hbm [shape: f32[1,128], index: 1, kind: output, shape index: {0}]   ;;  %s3459_s2 = inlined_call_operand.hbm [shape: f32[1,128], index: 2, kind: output, shape index: {1}]  }
   0x1   :  { %9 = vsyncpa [#allocation4], 0 }
   0x2   :  { %10 = vsyncpa [#allocation7], 0  ;;  %s16_s11 = sshll.u32 %s3457_s0, 4  ;;  %s2306_s12 = smov [#allocation2]   ;;  %s17_s11 = int_to_ptr.hbm [resolvable:$true] %s16_s11 }
   0x3   :  { %s18_s13 = sshll.u32 %s2306_s12, 4  ;;  %s19_s13 = int_to_ptr.vmem [resolvable:$true] %s18_s13 }
   0x4   :  { %21 = dma.hbm_to_vmem [thread:$0]  %s17_s11, 64, %s19_s13, [#allocation3]  }
   0x5   :  { %2300 = dma.done.wait [#allocation3], 64  }
   0x6   :  { %2301 = vsyncadd [#allocation3], 4294967232  ;;  %v2393_v0 = vld [vmem:[#allocation2] sm:$0xf]  ;;  %s2307_s14 = smov 118   ;;  %s2308_s15 = smov 122  }
   0x7   :  { %46 = vrot.lane.b32.xlu2 %v2393_v0, %s2307_s14  ;;  %38 = vrot.lane.b32.xlu1 %v2393_v0, %s2308_s15  ;;  %s2309_s16 = smov 126   ;;  %s2310_s17 = smov 116   ;;  %vm672_vm0 = vcmask 57344   ;;  %vm766_vm1 = vcmask 122944   ;;  %vm860_vm2 = vcmask 188544   ;;  %vm954_vm3 = vcmask 254144  }
   0x8   :  { %30 = vrot.lane.b32.xlu0 %v2393_v0, %s2309_s16  ;;  %s2311_s0 = smov 120   ;;  %s2312_s18 = smov 124   ;;  %vm1048_vm4 = vcmask 319744   ;;  %vm1142_vm5 = vcmask 385344   ;;  %vm1236_vm6 = vcmask 450944   ;;  %vm1330_vm7 = vcmask 516544  }
   0x9   :  { %s2313_s19 = smov 110   ;;  %s2314_s20 = smov 112   ;;  %vm1424_vm8 = vcmask 582144   ;;  %vm1518_vm9 = vcmask 647744   ;;  %vm1612_vm10 = vcmask 713344   ;;  %vm1706_vm11 = vcmask 778944  }
   0xa   :  { %s2315_s21 = smov 114   ;;  %s2316_s22 = smov 104   ;;  %vm1800_vm12 = vcmask 844544   ;;  %vm1894_vm13 = vcmask 910144   ;;  %vm1988_vm14 = vcmask 975744   ;;  %vm2082_vm15 = vcmask 1041344  }
   0xb   :  { %s2317_s23 = smov 106   ;;  %s2318_s24 = smov 108  }
   0xc   :  { %s2319_s25 = smov 98   ;;  %s2320_s26 = smov 100  }
   0xd   :  { %s2321_s27 = smov 102   ;;  %s2322_s28 = smov 92  }
   0xe   :  { %s2323_s29 = smov 94   ;;  %s2324_s30 = smov 96  }
   0xf   :  { %50 = vrot.lane.b32.xlu2 %v2393_v0, %s2310_s17  ;;  %42 = vrot.lane.b32.xlu1 %v2393_v0, %s2311_s0  ;;  %s2325_s3 = smov 86   ;;  %s2326_s4 = smov 88  }
  0x10   :  { %34 = vrot.lane.b32.xlu0 %v2393_v0, %s2312_s18  ;;  %s2327_s5 = smov 90   ;;  %s2328_s6 = smov 80  }
  0x11   :  { %s2329_s7 = smov 82   ;;  %s2330_s8 = smov 84  }
  0x12   :  { %s2331_s9 = smov 74   ;;  %s2332_s10 = smov 76  }
  0x13   :  { %s2333_s11 = smov 78   ;;  %s2334_s12 = smov 68  }
  0x14   :  { %s2335_s13 = smov 70   ;;  %s2336_s14 = smov 72  }
  0x15   :  { %s2337_s15 = smov 62   ;;  %s2338_s16 = smov 64  }
  0x16   :  { %s2339_s17 = smov 66   ;;  %s2340_s0 = smov 56  }
  0x17   :  { %62 = vrot.lane.b32.xlu2 %v2393_v0, %s2313_s19  ;;  %58 = vrot.lane.b32.xlu1 %v2393_v0, %s2314_s20  ;;  %s2341_s18 = smov 58   ;;  %s2342_s19 = smov 60  }
  0x18   :  { %54 = vrot.lane.b32.xlu0 %v2393_v0, %s2315_s21  ;;  %s2343_s20 = smov 50   ;;  %s2344_s21 = smov 52  }
  0x1f   :  { %74 = vrot.lane.b32.xlu2 %v2393_v0, %s2316_s22  ;;  %70 = vrot.lane.b32.xlu1 %v2393_v0, %s2317_s23  ;;  %s2345_s22 = smov 54   ;;  %s2346_s23 = smov 44  }
  0x20   :  { %66 = vrot.lane.b32.xlu0 %v2393_v0, %s2318_s24  ;;  %s2347_s24 = smov 46  }
  0x27   :  { %86 = vrot.lane.b32.xlu2 %v2393_v0, %s2319_s25  ;;  %82 = vrot.lane.b32.xlu1 %v2393_v0, %s2320_s26  ;;  %s2348_s25 = smov 48   ;;  %s2349_s26 = smov 38  }
  0x28   :  { %78 = vrot.lane.b32.xlu0 %v2393_v0, %s2321_s27  ;;  %s2350_s27 = smov 40  }
  0x2f   :  { %98 = vrot.lane.b32.xlu2 %v2393_v0, %s2322_s28  ;;  %94 = vrot.lane.b32.xlu1 %v2393_v0, %s2323_s29  ;;  %s2351_s28 = smov 42   ;;  %s2352_s29 = smov 32  }
  0x30   :  { %90 = vrot.lane.b32.xlu0 %v2393_v0, %s2324_s30  ;;  %s2353_s30 = smov 34  }
  0x37   :  { %110 = vrot.lane.b32.xlu2 %v2393_v0, %s2325_s3  ;;  %106 = vrot.lane.b32.xlu1 %v2393_v0, %s2326_s4  ;;  %s2354_s3 = smov 36   ;;  %s2355_s4 = smov 26  }
  0x38   :  { %102 = vrot.lane.b32.xlu0 %v2393_v0, %s2327_s5  ;;  %s2356_s5 = smov 28  }
  0x3f   :  { %122 = vrot.lane.b32.xlu2 %v2393_v0, %s2328_s6  ;;  %118 = vrot.lane.b32.xlu1 %v2393_v0, %s2329_s7  ;;  %s2357_s6 = smov 30   ;;  %s2358_s7 = smov 20  }
  0x40   :  { %114 = vrot.lane.b32.xlu0 %v2393_v0, %s2330_s8  ;;  %s2359_s8 = smov 22  }
  0x47   :  { %134 = vrot.lane.b32.xlu2 %v2393_v0, %s2331_s9  ;;  %130 = vrot.lane.b32.xlu1 %v2393_v0, %s2332_s10  ;;  %s2360_s9 = smov 24   ;;  %s2361_s10 = smov 14  }
  0x48   :  { %126 = vrot.lane.b32.xlu0 %v2393_v0, %s2333_s11  ;;  %s2362_s11 = smov 16  }
  0x4f   :  { %146 = vrot.lane.b32.xlu2 %v2393_v0, %s2334_s12  ;;  %142 = vrot.lane.b32.xlu1 %v2393_v0, %s2335_s13  ;;  %s2363_s12 = smov 18   ;;  %s2364_s13 = smov 8  }
  0x50   :  { %138 = vrot.lane.b32.xlu0 %v2393_v0, %s2336_s14  ;;  %s2365_s14 = smov 10  }
  0x57   :  { %158 = vrot.lane.b32.xlu2 %v2393_v0, %s2337_s15  ;;  %154 = vrot.lane.b32.xlu1 %v2393_v0, %s2338_s16  ;;  %s2366_s15 = smov 12   ;;  %s2367_s16 = smov 2  }
  0x58   :  { %150 = vrot.lane.b32.xlu0 %v2393_v0, %s2339_s17  ;;  %s2368_s17 = smov 4  }
  0x5f   :  { %170 = vrot.lane.b32.xlu2 %v2393_v0, %s2340_s0  ;;  %166 = vrot.lane.b32.xlu1 %v2393_v0, %s2341_s18  ;;  %s2369_s0 = smov 6   ;;  %s2370_s18 = smov 127  }
  0x60   :  { %162 = vrot.lane.b32.xlu0 %v2393_v0, %s2342_s19  ;;  %s2373_s19 = smov [#allocation5]  }
  0x61   :  { %v2431_v1 = vpop.permute.xlu2 %46 }
  0x62   :  { %3652 = vst [vmem:[#allocation11_spill] sm:$0xff] %v2431_v1 }
  0x67   :  { %182 = vrot.lane.b32.xlu2 %v2393_v0, %s2343_s20  ;;  %178 = vrot.lane.b32.xlu1 %v2393_v0, %s2344_s21  ;;  %s2111_s20 = sshll.u32 %s2373_s19, 4  ;;  %s2112_s20 = int_to_ptr.vmem [resolvable:$true] %s2111_s20 }
  0x68   :  { %174 = vrot.lane.b32.xlu0 %v2393_v0, %s2345_s22 }
  0x69   :  { %v2436_v2 = vpop.permute.xlu2 %50 }
  0x6a   :  { %3653 = vst [vmem:[#allocation12_spill] sm:$0xff] %v2436_v2 }
  0x6f   :  { %194 = vrot.lane.b32.xlu2 %v2393_v0, %s2346_s23  ;;  %190 = vrot.lane.b32.xlu1 %v2393_v0, %s2347_s24  ;;  %s2113_s23 = sshll.u32 %s3458_s1, 4  ;;  %s2374_s24 = smov [#allocation6]   ;;  %s2114_s23 = int_to_ptr.hbm [resolvable:$true] %s2113_s23 }
  0x70   :  { %186 = vrot.lane.b32.xlu0 %v2393_v0, %s2348_s25  ;;  %s2122_s25 = sshll.u32 %s2374_s24, 4  ;;  %s2123_s25 = int_to_ptr.vmem [resolvable:$true] %s2122_s25 }
  0x71   :  { %v2441_v3 = vpop.permute.xlu2 %62 }
  0x72   :  { %3654 = vst [vmem:[#allocation13_spill] sm:$0xff] %v2441_v3 }
  0x77   :  { %206 = vrot.lane.b32.xlu2 %v2393_v0, %s2349_s26  ;;  %202 = vrot.lane.b32.xlu1 %v2393_v0, %s2350_s27 }
  0x78   :  { %198 = vrot.lane.b32.xlu0 %v2393_v0, %s2351_s28  ;;  %s2124_s28 = sshll.u32 %s3459_s2, 4  ;;  %s2125_s28 = int_to_ptr.hbm [resolvable:$true] %s2124_s28 }
  0x79   :  { %v2446_v4 = vpop.permute.xlu2 %74  ;;  %v2448_v5 = vpop.permute.xlu1 %38 }
  0x7a   :  { %3655 = vst [vmem:[#allocation14_spill] sm:$0xff] %v2446_v4  ;;  %v2450_v6 = vpop.permute.xlu0 %30 }
  0x7b   :  { %3656 = vst [vmem:[#allocation15_spill] sm:$0xff] %v2448_v5 }
  0x7c   :  { %3657 = vst [vmem:[#allocation16_spill] sm:$0xff] %v2450_v6 }
  0x7f   :  { %218 = vrot.lane.b32.xlu2 %v2393_v0, %s2352_s29  ;;  %214 = vrot.lane.b32.xlu1 %v2393_v0, %s2353_s30 }
  0x80   :  { %210 = vrot.lane.b32.xlu0 %v2393_v0, %s2354_s3 }
  0x81   :  { %v2455_v7 = vpop.permute.xlu2 %86  ;;  %v2457_v8 = vpop.permute.xlu1 %42 }
  0x82   :  { %3658 = vst [vmem:[#allocation17_spill] sm:$0xff] %v2455_v7  ;;  %v2459_v9 = vpop.permute.xlu0 %34 }
  0x83   :  { %3659 = vst [vmem:[#allocation18_spill] sm:$0xff] %v2457_v8 }
  0x84   :  { %3660 = vst [vmem:[#allocation19_spill] sm:$0xff] %v2459_v9 }
  0x87   :  { %230 = vrot.lane.b32.xlu2 %v2393_v0, %s2355_s4  ;;  %226 = vrot.lane.b32.xlu1 %v2393_v0, %s2356_s5 }
  0x88   :  { %222 = vrot.lane.b32.xlu0 %v2393_v0, %s2357_s6 }
  0x89   :  { %v2464_v10 = vpop.permute.xlu2 %98  ;;  %v2466_v11 = vpop.permute.xlu1 %58 }
  0x8a   :  { %3661 = vst [vmem:[#allocation20_spill] sm:$0xff] %v2464_v10  ;;  %v2468_v12 = vpop.permute.xlu0 %54 }
  0x8b   :  { %3662 = vst [vmem:[#allocation21_spill] sm:$0xff] %v2468_v12 }
  0x8f   :  { %242 = vrot.lane.b32.xlu2 %v2393_v0, %s2358_s7  ;;  %238 = vrot.lane.b32.xlu1 %v2393_v0, %s2359_s8 }
  0x90   :  { %234 = vrot.lane.b32.xlu0 %v2393_v0, %s2360_s9 }
  0x91   :  { %v2473_v13 = vpop.permute.xlu2 %110  ;;  %v2475_v14 = vpop.permute.xlu1 %70 }
  0x92   :  { %3663 = vst [vmem:[#allocation22_spill] sm:$0xff] %v2473_v13  ;;  %v2477_v15 = vpop.permute.xlu0 %66 }
  0x93   :  { %3664 = vst [vmem:[#allocation23_spill] sm:$0xff] %v2475_v14 }
  0x94   :  { %3665 = vst [vmem:[#allocation24_spill] sm:$0xff] %v2477_v15 }
  0x97   :  { %254 = vrot.lane.b32.xlu2 %v2393_v0, %s2361_s10  ;;  %250 = vrot.lane.b32.xlu1 %v2393_v0, %s2362_s11 }
  0x98   :  { %246 = vrot.lane.b32.xlu0 %v2393_v0, %s2363_s12 }
  0x99   :  { %v2482_v16 = vpop.permute.xlu2 %122  ;;  %v2484_v17 = vpop.permute.xlu1 %82 }
  0x9a   :  { %3666 = vst [vmem:[#allocation25_spill] sm:$0xff] %v2482_v16  ;;  %v2486_v18 = vpop.permute.xlu0 %78 }
  0x9b   :  { %3667 = vst [vmem:[#allocation26_spill] sm:$0xff] %v2484_v17 }
  0x9c   :  { %3668 = vst [vmem:[#allocation27_spill] sm:$0xff] %v2486_v18 }
  0x9f   :  { %266 = vrot.lane.b32.xlu2 %v2393_v0, %s2364_s13  ;;  %262 = vrot.lane.b32.xlu1 %v2393_v0, %s2365_s14 }
  0xa0   :  { %258 = vrot.lane.b32.xlu0 %v2393_v0, %s2366_s15 }
  0xa1   :  { %v2491_v19 = vpop.permute.xlu2 %134  ;;  %v2493_v20 = vpop.permute.xlu1 %94 }
  0xa2   :  { %3669 = vst [vmem:[#allocation28_spill] sm:$0xff] %v2491_v19  ;;  %v2495_v21 = vpop.permute.xlu0 %90 }
  0xa7   :  { %278 = vrot.lane.b32.xlu2 %v2393_v0, %s2367_s16  ;;  %274 = vrot.lane.b32.xlu1 %v2393_v0, %s2368_s17 }
  0xa8   :  { %270 = vrot.lane.b32.xlu0 %v2393_v0, %s2369_s0 }
  0xa9   :  { %v2500_v22 = vpop.permute.xlu2 %146  ;;  %v2502_v23 = vpop.permute.xlu1 %106 }
  0xaa   :  { %3670 = vst [vmem:[#allocation29_spill] sm:$0xff] %v2500_v22  ;;  %v2504_v24 = vpop.permute.xlu0 %102 }
  0xaf   :  { %603 = vrot.lane.b32.xlu1 %v2450_v6, %s2370_s18  ;;  %605 = vrot.lane.b32.xlu2 %v2459_v9, %s2370_s18 }
  0xb0   :  { %601 = vrot.lane.b32.xlu0 %v2393_v0, %s2370_s18 }
  0xb1   :  { %v2512_v25 = vpop.permute.xlu2 %158  ;;  %v2514_v26 = vpop.permute.xlu1 %118 }
  0xb2   :  { %3671 = vst [vmem:[#allocation30_spill] sm:$0xff] %v2512_v25  ;;  %v2516_v27 = vpop.permute.xlu0 %114 }
  0xb3   :  { %3672 = vst [vmem:[#allocation31_spill] sm:$0xff] %v2516_v27 }
  0xb7   :  { %609 = vrot.lane.b32.xlu1 %v2457_v8, %s2370_s18  ;;  %611 = vrot.lane.b32.xlu2 %v2431_v1, %s2370_s18 }
  0xb8   :  { %607 = vrot.lane.b32.xlu0 %v2448_v5, %s2370_s18 }
  0xb9   :  { %v2524_v28 = vpop.permute.xlu2 %170  ;;  %v2526_v29 = vpop.permute.xlu1 %130 }
  0xba   :  { %3673 = vst [vmem:[#allocation32_spill] sm:$0xff] %v2524_v28  ;;  %v2528_v30 = vpop.permute.xlu0 %126 }
  0xbb   :  { %3674 = vst [vmem:[#allocation33_spill] sm:$0xff] %v2526_v29 }
  0xbc   :  { %3675 = vst [vmem:[#allocation34_spill] sm:$0xff] %v2528_v30 }
  0xbf   :  { %698 = vrot.lane.b32.xlu2 %v2493_v20, %s2370_s18  ;;  %615 = vrot.lane.b32.xlu1 %v2468_v12, %s2370_s18 }
  0xc0   :  { %613 = vrot.lane.b32.xlu0 %v2436_v2, %s2370_s18 }
  0xc1   :  { %v2536_v31 = vpop.permute.xlu2 %182  ;;  %v2538_v32 = vpop.permute.xlu1 %142 }
  0xc2   :  { %3676 = vst [vmem:[#allocation35_spill] sm:$0xff] %v2536_v31  ;;  %v2540_v33 = vpop.permute.xlu0 %138 }
  0xc3   :  { %3677 = vst [vmem:[#allocation36_spill] sm:$0xff] %v2538_v32 }
  0xc4   :  { %3678 = vst [vmem:[#allocation37_spill] sm:$0xff] %v2540_v33 }
  0xc7   :  { %696 = vrot.lane.b32.xlu1 %v2495_v21, %s2370_s18  ;;  %702 = vrot.lane.b32.xlu2 %v2504_v24, %s2370_s18 }
  0xc8   :  { %704 = vrot.lane.b32.xlu0 %v2502_v23, %s2370_s18 }
  0xc9   :  { %v2548_v34 = vpop.permute.xlu2 %194  ;;  %v2550_v35 = vpop.permute.xlu1 %154 }
  0xca   :  { %3679 = vst [vmem:[#allocation38_spill] sm:$0xff] %v2548_v34  ;;  %v2552_v36 = vpop.permute.xlu0 %150 }
  0xcb   :  { %3680 = vst [vmem:[#allocation39_spill] sm:$0xff] %v2552_v36 }
  0xcf   :  { %700 = vrot.lane.b32.xlu1 %v2464_v10, %s2370_s18  ;;  %708 = vrot.lane.b32.xlu2 %v2516_v27, %s2370_s18 }
  0xd0   :  { %710 = vrot.lane.b32.xlu0 %v2514_v26, %s2370_s18 }
  0xd1   :  { %v2560_v37 = vpop.permute.xlu2 %206  ;;  %v2562_v38 = vpop.permute.xlu1 %166 }
  0xd2   :  { %3681 = vst [vmem:[#allocation40_spill] sm:$0xff] %v2560_v37  ;;  %v2564_v39 = vpop.permute.xlu0 %162 }
  0xd3   :  { %3682 = vst [vmem:[#allocation41_spill] sm:$0xff] %v2564_v39 }
  0xd7   :  { %706 = vrot.lane.b32.xlu1 %v2473_v13, %s2370_s18  ;;  %794 = vrot.lane.b32.xlu2 %v2564_v39, %s2370_s18 }
  0xd8   :  { %790 = vrot.lane.b32.xlu0 %v2550_v35, %s2370_s18 }
  0xd9   :  { %v2572_v40 = vpop.permute.xlu2 %218  ;;  %v2574_v41 = vpop.permute.xlu1 %178 }
  0xda   :  { %3683 = vst [vmem:[#allocation42_spill] sm:$0xff] %v2572_v40  ;;  %v2576_v42 = vpop.permute.xlu0 %174 }
  0xdb   :  { %3684 = vst [vmem:[#allocation43_spill] sm:$0xff] %v2576_v42 }
  0xdf   :  { %792 = vrot.lane.b32.xlu1 %v2512_v25, %s2370_s18  ;;  %800 = vrot.lane.b32.xlu2 %v2576_v42, %s2370_s18 }
  0xe0   :  { %796 = vrot.lane.b32.xlu0 %v2562_v38, %s2370_s18 }
  0xe1   :  { %v2584_v43 = vpop.permute.xlu2 %230  ;;  %v2586_v44 = vpop.permute.xlu1 %190 }
  0xe2   :  { %3685 = vst [vmem:[#allocation44_spill] sm:$0xff] %v2584_v43  ;;  %v2588_v45 = vpop.permute.xlu0 %186 }
  0xe3   :  { %3686 = vst [vmem:[#allocation45_spill] sm:$0xff] %v2586_v44 }
  0xe4   :  { %3687 = vst [vmem:[#allocation46_spill] sm:$0xff] %v2588_v45 }
  0xe7   :  { %798 = vrot.lane.b32.xlu1 %v2524_v28, %s2370_s18 }
  0xe8   :  { %802 = vrot.lane.b32.xlu0 %v2574_v41, %s2370_s18 }
  0xe9   :  { %v2594_v46 = vpop.permute.xlu2 %242  ;;  %v2596_v47 = vpop.permute.xlu1 %202 }
  0xea   :  { %3688 = vst [vmem:[#allocation47_spill] sm:$0xff] %v2594_v46  ;;  %v2598_v48 = vpop.permute.xlu0 %198 }
  0xeb   :  { %3689 = vst [vmem:[#allocation48_spill] sm:$0xff] %v2596_v47 }
  0xec   :  { %3690 = vst [vmem:[#allocation49_spill] sm:$0xff] %v2598_v48 }
  0xef   :  { %804 = vrot.lane.b32.xlu1 %v2536_v31, %s2370_s18 }
  0xf1   :  { %v2602_v49 = vpop.permute.xlu2 %254  ;;  %v2604_v50 = vpop.permute.xlu1 %214 }
  0xf2   :  { %3691 = vst [vmem:[#allocation50_spill] sm:$0xff] %v2602_v49  ;;  %v2606_v51 = vpop.permute.xlu0 %210 }
  0xf3   :  { %3692 = vst [vmem:[#allocation51_spill] sm:$0xff] %v2604_v50 }
  0xf4   :  { %3693 = vst [vmem:[#allocation52_spill] sm:$0xff] %v2606_v51 }
  0xf7   :  { %884 = vrot.lane.b32.xlu1 %v2572_v40, %s2370_s18  ;;  %v3491_v40 = vmov 1  }
  0xf8   :  { %2209 = vset.pattern.permute.xlu0 %v3491_v40 }
  0xf9   :  { %v2610_v52 = vpop.permute.xlu2 %266  ;;  %v2612_v53 = vpop.permute.xlu1 %226 }
  0xfa   :  { %3694 = vst [vmem:[#allocation53_spill] sm:$0xff] %v2610_v52  ;;  %v2614_v54 = vpop.permute.xlu0 %222  ;;  %888 = vrot.lane.b32.xlu0 %v2612_v53, %s2370_s18 }
  0xfb   :  { %3695 = vst [vmem:[#allocation54_spill] sm:$0xff] %v2612_v53  ;;  %886 = vrot.lane.b32.xlu2 %v2614_v54, %s2370_s18 }
  0xfc   :  { %3696 = vst [vmem:[#allocation55_spill] sm:$0xff] %v2614_v54 }
  0xff   :  { %890 = vrot.lane.b32.xlu1 %v2584_v43, %s2370_s18 }
 0x101   :  { %v2622_v55 = vpop.permute.xlu2 %278  ;;  %v2624_v56 = vpop.permute.xlu1 %238 }
 0x102   :  { %3697 = vst [vmem:[#allocation56_spill] sm:$0xff] %v2622_v55  ;;  %v2626_v57 = vpop.permute.xlu0 %234  ;;  %894 = vrot.lane.b32.xlu0 %v2624_v56, %s2370_s18 }
 0x103   :  { %3698 = vst [vmem:[#allocation57_spill] sm:$0xff] %v2624_v56  ;;  %892 = vrot.lane.b32.xlu2 %v2626_v57, %s2370_s18 }
 0x104   :  { %3699 = vst [vmem:[#allocation58_spill] sm:$0xff] %v2626_v57 }
 0x107   :  { %896 = vrot.lane.b32.xlu1 %v2594_v46, %s2370_s18 }
 0x109   :  { %v2634_v58 = vpop.permute.xlu1 %250  ;;  %v606_v59 = vpop.permute.xlu2 %605 }
 0x10a   :  { %3700 = vst [vmem:[#allocation59_spill] sm:$0xff] %v2634_v58  ;;  %v627_v60 = vadd.f32 %v606_v59, %v2459_v9  ;;  %v2637_v61 = vpop.permute.xlu0 %246 }
 0x10b   :  { %3701 = vst [vmem:[#allocation60_spill] sm:$0xff] %v2637_v61  ;;  %898 = vrot.lane.b32.xlu2 %v2637_v61, %s2370_s18 }
 0x10c   :  { %v635_v62 = vadd.f32 %v627_v60, %v2477_v15 }
 0x10e   :  { %653 = vst [vmem:[#allocation1 + $0x2] ss:$9 sm:$0xff] %v635_v62 }
 0x111   :  { %v2642_v63 = vpop.permute.xlu1 %262  ;;  %v612_v55 = vpop.permute.xlu2 %611 }
 0x112   :  { %3702 = vst [vmem:[#allocation61_spill] sm:$0xff] %v2642_v63  ;;  %v630_v52 = vadd.f32 %v612_v55, %v2431_v1  ;;  %v2645_v56 = vpop.permute.xlu0 %258 }
 0x113   :  { %3703 = vst [vmem:[#allocation62_spill] sm:$0xff] %v2645_v56  ;;  %v3478_v56 = vmov 0  }
 0x114   :  { %v638_v58 = vadd.f32 %v630_v52, %v2486_v18  ;;  %2208 = vset.pattern.permute.xlu2 %v3478_v56  ;;  %2210 = vset.pattern.permute.xlu1 %v3478_v56 }
 0x116   :  { %659 = vst [vmem:[#allocation1 + $0x5] ss:$9 sm:$0xff] %v638_v58 }
 0x119   :  { %v2648_v46 = vpop.permute.xlu1 %274 }
 0x11a   :  { %3704 = vst [vmem:[#allocation63_spill] sm:$0xff] %v2648_v46  ;;  %v2650_v59 = vpop.permute.xlu0 %270 }
 0x11b   :  { %3705 = vst [vmem:[#allocation64_spill] sm:$0xff] %v2650_v59 }
 0x121   :  { %v604_v53 = vpop.permute.xlu1 %603 }
 0x122   :  { %v626_v49 = vadd.f32 %v604_v53, %v2450_v6  ;;  %v602_v43 = vpop.permute.xlu0 %601 }
 0x123   :  { %v625_v60 = vadd.f32 %v602_v43, %v2393_v0 }
 0x124   :  { %v634_v62 = vadd.f32 %v626_v49, %v2441_v3  ;;  %v699_v49 = vpop.permute.xlu2 %698 }
 0x125   :  { %v633_v63 = vadd.f32 %v625_v60, %v2466_v11 }
 0x126   :  { %651 = vst [vmem:[#allocation1 + $0x1] ss:$9 sm:$0xff] %v634_v62 }
 0x127   :  { %649 = vst [vmem:[#allocation1] ss:$9 sm:$0xff] %v633_v63 }
 0x129   :  { %v610_v55 = vpop.permute.xlu1 %609 }
 0x12a   :  { %v629_v52 = vadd.f32 %v610_v55, %v2457_v8  ;;  %v608_v58 = vpop.permute.xlu0 %607 }
 0x12b   :  { %v628_v53 = vadd.f32 %v608_v58, %v2448_v5 }
 0x12c   :  { %v637_v46 = vadd.f32 %v629_v52, %v2446_v4 }
 0x12d   :  { %v636_v43 = vadd.f32 %v628_v53, %v2475_v14  ;;  %v703_v53 = vpop.permute.xlu2 %702 }
 0x12e   :  { %657 = vst [vmem:[#allocation1 + $0x4] ss:$9 sm:$0xff] %v637_v46 }
 0x12f   :  { %655 = vst [vmem:[#allocation1 + $0x3] ss:$9 sm:$0xff] %v636_v43 }
 0x131   :  { %v616_v60 = vpop.permute.xlu1 %615 }
 0x132   :  { %v632_v63 = vadd.f32 %v616_v60, %v2468_v12  ;;  %v614_v62 = vpop.permute.xlu0 %613 }
 0x133   :  { %v631_v59 = vadd.f32 %v614_v62, %v2436_v2 }
 0x134   :  { %v640_v55 = vadd.f32 %v632_v63, %v2455_v7 }
 0x135   :  { %v639_v58 = vadd.f32 %v631_v59, %v2484_v17  ;;  %v3488_v59 = vrot.slane %v2393_v0, 1  ;;  %v709_v63 = vpop.permute.xlu2 %708 }
 0x136   :  { %663 = vst [vmem:[#allocation1 + $0x7] ss:$9 sm:$0xff] %v640_v55  ;;  %v726_v62 = vadd.f32 %v709_v63, %v2516_v27  ;;  %v721_v55 = vadd.f32 %v699_v49, %v2493_v20  ;;  %v3496_v49 = vrot.slane %v2459_v9, 1 }
 0x137   :  { %661 = vst [vmem:[#allocation1 + $0x6] ss:$9 sm:$0xff] %v639_v58 }
 0x138   :  { %v729_v63 = vadd.f32 %v721_v55, %v2528_v30 }
 0x139   :  { %v697_v52 = vpop.permute.xlu1 %696 }
 0x13a   :  { %v705_v43 = vpop.permute.xlu0 %704 }
 0x13e   :  { %v664_v46 = vld [vmem:[#allocation1] sm:$0xff] }
 0x13f   :  { %674 = vst [vmem:[#allocation1] ss:$9 sm:$0xff] %v2466_v11  ;;  %666 = vperm.xlu2 %2208, %v664_v46   ;;  %v723_v46 = vadd.f32 %v703_v53, %v2504_v24 }
 0x140   :  { %676 = vst [vmem:[#allocation1 + $0x1] ss:$9 sm:$0xff] %v2441_v3  ;;  %v724_v3 = vadd.f32 %v705_v43, %v2502_v23 }
 0x141   :  { %678 = vst [vmem:[#allocation1 + $0x2] ss:$9 sm:$0xff] %v2477_v15  ;;  %v701_v60 = vpop.permute.xlu1 %700  ;;  %v731_v53 = vadd.f32 %v723_v46, %v2491_v19  ;;  %v3495_v46 = vrot.slane %v2450_v6, 1 }
 0x142   :  { %680 = vst [vmem:[#allocation1 + $0x3] ss:$9 sm:$0xff] %v2475_v14  ;;  %v711_v58 = vpop.permute.xlu0 %710  ;;  %v732_v43 = vadd.f32 %v724_v3, %v2540_v33  ;;  %v3493_v3 = vrot.slane %v2436_v2, 1 }
 0x143   :  { %682 = vst [vmem:[#allocation1 + $0x4] ss:$9 sm:$0xff] %v2446_v4  ;;  %v720_v4 = vadd.f32 %v697_v52, %v2495_v21 }
 0x144   :  { %684 = vst [vmem:[#allocation1 + $0x5] ss:$9 sm:$0xff] %v2486_v18  ;;  %v722_v18 = vadd.f32 %v701_v60, %v2464_v10 }
 0x145   :  { %686 = vst [vmem:[#allocation1 + $0x6] ss:$9 sm:$0xff] %v2484_v17  ;;  %v728_v52 = vadd.f32 %v720_v4, %v2482_v16  ;;  %v3494_v4 = vrot.slane %v2448_v5, 1 }
 0x146   :  { %688 = vst [vmem:[#allocation1 + $0x7] ss:$9 sm:$0xff] %v2455_v7  ;;  %v734_v7 = vadd.f32 %v726_v62, %v2500_v22  ;;  %v730_v60 = vadd.f32 %v722_v18, %v2526_v29  ;;  %v795_v18 = vpop.permute.xlu2 %794 }
 0x147   :  { %978 = vrot.lane.b32.xlu2 %v3488_v59, %s2370_s18  ;;  %v727_v59 = vadd.f32 %v711_v58, %v2514_v26 }
 0x148   :  { %2211 = vset.pattern.permute.xlu2 %v3491_v40 }
 0x149   :  { %v707_v56 = vpop.permute.xlu1 %706 }
 0x14a   :  { %v725_v40 = vadd.f32 %v707_v56, %v2473_v13  ;;  %v735_v56 = vadd.f32 %v727_v59, %v2552_v36 }
 0x14c   :  { %v733_v62 = vadd.f32 %v725_v40, %v2538_v32 }
 0x14d   :  { %v689_v27 = vld [vmem:[#allocation1] sm:$0xff] }
 0x14e   :  { %756 = vst [vmem:[#allocation1 + $0x6] ss:$9 sm:$0xff] %v734_v7  ;;  %691 = vperm.xlu0 %2209, %v689_v27   ;;  %v791_v7 = vpop.permute.xlu0 %790  ;;  %v801_v58 = vpop.permute.xlu2 %800 }
 0x14f   :  { %746 = vst [vmem:[#allocation1 + $0x1] ss:$9 sm:$0xff] %v729_v63  ;;  %982 = vrot.lane.b32.xlu2 %v3496_v49, %s2370_s18  ;;  %v819_v63 = vadd.f32 %v801_v58, %v2576_v42 }
 0x150   :  { %750 = vst [vmem:[#allocation1 + $0x3] ss:$9 sm:$0xff] %v731_v53  ;;  %v3706_v53 = vmov 1  }
 0x151   :  { %744 = vst [vmem:[#allocation1] ss:$9 sm:$0xff] %v728_v52  ;;  %v793_v27 = vpop.permute.xlu1 %792  ;;  %v816_v52 = vadd.f32 %v795_v18, %v2564_v39  ;;  %v3501_v18 = vrot.slane %v2457_v8, 1 }
 0x152   :  { %752 = vst [vmem:[#allocation1 + $0x4] ss:$9 sm:$0xff] %v732_v43  ;;  %v814_v43 = vadd.f32 %v791_v7, %v2550_v35 }
 0x153   :  { %748 = vst [vmem:[#allocation1 + $0x2] ss:$9 sm:$0xff] %v730_v60  ;;  %v824_v58 = vadd.f32 %v816_v52, %v2548_v34 }
 0x154   :  { %758 = vst [vmem:[#allocation1 + $0x7] ss:$9 sm:$0xff] %v735_v56  ;;  %v822_v7 = vadd.f32 %v814_v43, %v2588_v45  ;;  %v3707_v43 = vmov 0  }
 0x155   :  { %754 = vst [vmem:[#allocation1 + $0x5] ss:$9 sm:$0xff] %v733_v62  ;;  %v815_v62 = vadd.f32 %v793_v27, %v2512_v25 }
 0x156   :  { %984 = vrot.lane.b32.xlu0 %v3494_v4, %s2370_s18  ;;  %v797_v59 = vpop.permute.xlu0 %796  ;;  %v887_v52 = vpop.permute.xlu2 %886 }
 0x157   :  { %v817_v4 = vadd.f32 %v797_v59, %v2562_v38  ;;  %v823_v27 = vadd.f32 %v815_v62, %v2586_v44 }
 0x159   :  { %v799_v40 = vpop.permute.xlu1 %798  ;;  %v825_v59 = vadd.f32 %v817_v4, %v2598_v48 }
 0x15c   :  { %v759_v55 = vld [vmem:[#allocation1] sm:$0xff] }
 0x15d   :  { %768 = vst [vmem:[#allocation1] ss:$9 sm:$0xff] %v2482_v16  ;;  %761 = vperm.xlu1 %2210, %v759_v55   ;;  %v818_v55 = vadd.f32 %v799_v40, %v2524_v28 }
 0x15e   :  { %770 = vst [vmem:[#allocation1 + $0x1] ss:$9 sm:$0xff] %v2528_v30  ;;  %990 = vrot.lane.b32.xlu0 %v3493_v3, %s2370_s18  ;;  %v803_v60 = vpop.permute.xlu0 %802  ;;  %v827_v3 = vadd.f32 %v819_v63, %v2560_v37  ;;  %v893_v4 = vpop.permute.xlu2 %892 }
 0x15f   :  { %772 = vst [vmem:[#allocation1 + $0x2] ss:$9 sm:$0xff] %v2526_v29  ;;  %v826_v40 = vadd.f32 %v818_v55, %v2596_v47  ;;  %v3514_v55 = vrot.slane %v2431_v1, 1 }
 0x160   :  { %774 = vst [vmem:[#allocation1 + $0x3] ss:$9 sm:$0xff] %v2491_v19 }
 0x161   :  { %776 = vst [vmem:[#allocation1 + $0x4] ss:$9 sm:$0xff] %v2540_v33  ;;  %v805_v56 = vpop.permute.xlu1 %804 }
 0x162   :  { %778 = vst [vmem:[#allocation1 + $0x5] ss:$9 sm:$0xff] %v2538_v32  ;;  %v821_v42 = vadd.f32 %v805_v56, %v2536_v31 }
 0x163   :  { %780 = vst [vmem:[#allocation1 + $0x6] ss:$9 sm:$0xff] %v2500_v22 }
 0x164   :  { %782 = vst [vmem:[#allocation1 + $0x7] ss:$9 sm:$0xff] %v2552_v36 }
 0x165   :  { %980 = vrot.lane.b32.xlu1 %v3495_v46, %s2370_s18  ;;  %v820_v46 = vadd.f32 %v803_v60, %v2574_v41  ;;  %v3500_v60 = vrot.slane %v2468_v12, 1 }
 0x166   :  { %2213 = vset.pattern.permute.xlu1 %v3706_v53 }
 0x167   :  { %v828_v63 = vadd.f32 %v820_v46, %v2606_v51 }
 0x16b   :  { %v783_v49 = vld [vmem:[#allocation1] sm:$0xff] }
 0x16c   :  { %848 = vst [vmem:[#allocation1 + $0x5] ss:$9 sm:$0xff] %v827_v3  ;;  %785 = vperm.xlu2 %2211, %v783_v49   ;;  %v829_v3 = vadd.f32 %v821_v42, %v2604_v50  ;;  %v885_v49 = vpop.permute.xlu1 %884  ;;  %v889_v46 = vpop.permute.xlu0 %888  ;;  %v3499_v42 = vrot.slane %v2495_v21, 1 }
 0x16d   :  { %842 = vst [vmem:[#allocation1 + $0x2] ss:$9 sm:$0xff] %v824_v58  ;;  %986 = vrot.lane.b32.xlu1 %v3501_v18, %s2370_s18  ;;  %v899_v58 = vpop.permute.xlu2 %898  ;;  %v3710_v18 = vld [vmem:[#allocation50_spill] sm:$0xff] }
 0x16e   :  { %838 = vst [vmem:[#allocation1] ss:$9 sm:$0xff] %v822_v7  ;;  %v909_v7 = vadd.f32 %v887_v52, %v2614_v54  ;;  %v3714_v52 = vld [vmem:[#allocation47_spill] sm:$0xff] }
 0x16f   :  { %840 = vst [vmem:[#allocation1 + $0x1] ss:$9 sm:$0xff] %v823_v27  ;;  %v912_v27 = vadd.f32 %v893_v4, %v2626_v57  ;;  %v3529_v4 = vrot.slane %v2493_v20, 1  ;;  %v3717_v57 = vld [vmem:[#allocation61_spill] sm:$0xff] }
 0x170   :  { %844 = vst [vmem:[#allocation1 + $0x3] ss:$9 sm:$0xff] %v825_v59  ;;  %v915_v59 = vadd.f32 %v899_v58, %v2637_v61  ;;  %v3715_v58 = vld [vmem:[#allocation56_spill] sm:$0xff] }
 0x171   :  { %846 = vst [vmem:[#allocation1 + $0x4] ss:$9 sm:$0xff] %v826_v40 }
 0x172   :  { %850 = vst [vmem:[#allocation1 + $0x6] ss:$9 sm:$0xff] %v828_v63  ;;  %v923_v61 = vadd.f32 %v915_v59, %v3715_v58 }
 0x173   :  { %852 = vst [vmem:[#allocation1 + $0x7] ss:$9 sm:$0xff] %v829_v3  ;;  %v3708_v3 = vld [vmem:[#allocation42_spill] sm:$0xff] }
 0x174   :  { %2212 = vset.pattern.permute.xlu2 %v3707_v43  ;;  %v891_v62 = vpop.permute.xlu1 %890  ;;  %v895_v40 = vpop.permute.xlu0 %894 }
 0x175   :  { %992 = vrot.lane.b32.xlu1 %v3500_v60, %s2370_s18 }
 0x17a   :  { %v853_v56 = vld [vmem:[#allocation1] sm:$0xff] }
 0x17b   :  { %862 = vst [vmem:[#allocation1] ss:$9 sm:$0xff] %v2588_v45  ;;  %855 = vperm.xlu2 %2212, %v853_v56   ;;  %v908_v56 = vadd.f32 %v885_v49, %v3708_v3  ;;  %v3716_v49 = vld [vmem:[#allocation59_spill] sm:$0xff] }
 0x17c   :  { %864 = vst [vmem:[#allocation1 + $0x1] ss:$9 sm:$0xff] %v2586_v44  ;;  %v897_v63 = vpop.permute.xlu1 %896 }
 0x17d   :  { %866 = vst [vmem:[#allocation1 + $0x2] ss:$9 sm:$0xff] %v2548_v34  ;;  %1072 = vrot.lane.b32.xlu1 %v3499_v42, %s2370_s18  ;;  %v3709_v42 = vld [vmem:[#allocation44_spill] sm:$0xff]  ;;  %v914_v54 = vadd.f32 %v897_v63, %v3714_v52 }
 0x17e   :  { %868 = vst [vmem:[#allocation1 + $0x3] ss:$9 sm:$0xff] %v2598_v48  ;;  %v911_v60 = vadd.f32 %v891_v62, %v3709_v42  ;;  %v3713_v48 = vld [vmem:[#allocation53_spill] sm:$0xff]  ;;  %v916_v62 = vadd.f32 %v908_v56, %v3716_v49  ;;  %v3526_v56 = vrot.slane %v2550_v35, 1 }
 0x17f   :  { %870 = vst [vmem:[#allocation1 + $0x4] ss:$9 sm:$0xff] %v2596_v47  ;;  %v917_v47 = vadd.f32 %v909_v7, %v3710_v18 }
 0x180   :  { %872 = vst [vmem:[#allocation1 + $0x5] ss:$9 sm:$0xff] %v2560_v37  ;;  %v3712_v37 = vld [vmem:[#allocation57_spill] sm:$0xff]  ;;  %v919_v7 = vadd.f32 %v911_v60, %v3717_v57  ;;  %v3525_v60 = vrot.slane %v2504_v24, 1 }
 0x181   :  { %874 = vst [vmem:[#allocation1 + $0x6] ss:$9 sm:$0xff] %v2606_v51  ;;  %v913_v51 = vadd.f32 %v895_v40, %v3712_v37  ;;  %v3719_v40 = vld [vmem:[#allocation64_spill] sm:$0xff]  ;;  %v3720_v37 = vld [vmem:[#allocation63_spill] sm:$0xff] }
 0x182   :  { %876 = vst [vmem:[#allocation1 + $0x7] ss:$9 sm:$0xff] %v2604_v50  ;;  %v3711_v50 = vld [vmem:[#allocation54_spill] sm:$0xff] }
 0x183   :  { %988 = vrot.lane.b32.xlu2 %v3514_v55, %s2370_s18  ;;  %v910_v44 = vadd.f32 %v889_v46, %v3711_v50  ;;  %v920_v55 = vadd.f32 %v912_v27, %v3713_v48  ;;  %v3718_v46 = vld [vmem:[#allocation62_spill] sm:$0xff]  ;;  %v921_v63 = vadd.f32 %v913_v51, %v3719_v40 }
 0x185   :  { %v918_v27 = vadd.f32 %v910_v44, %v3718_v46  ;;  %v668_v44 = vlaneseq }
 0x189   :  { %v877_v31 = vld [vmem:[#allocation1] sm:$0xff] }
 0x18a   :  { %934 = vst [vmem:[#allocation1 + $0x1] ss:$9 sm:$0xff] %v917_v47  ;;  %879 = vperm.xlu0 %2209, %v877_v31   ;;  %v922_v47 = vadd.f32 %v914_v54, %v3720_v37  ;;  %v3524_v31 = vrot.slane %v2502_v23, 1  ;;  %v3523_v54 = vrot.slane %v2514_v26, 1 }
 0x18b   :  { %940 = vst [vmem:[#allocation1 + $0x4] ss:$9 sm:$0xff] %v920_v55  ;;  %1074 = vrot.lane.b32.xlu2 %v3529_v4, %s2370_s18 }
 0x18c   :  { %946 = vst [vmem:[#allocation1 + $0x7] ss:$9 sm:$0xff] %v923_v61  ;;  %v2794_v61 = vand.u32 127, %v668_v44 }
 0x18d   :  { %932 = vst [vmem:[#allocation1] ss:$9 sm:$0xff] %v916_v62 }
 0x18e   :  { %936 = vst [vmem:[#allocation1 + $0x2] ss:$9 sm:$0xff] %v918_v27  ;;  %v3722_v27 = vrot.slane %v2393_v0, 1  ;;  %v3528_v0 = vrot.slane %v2473_v13, 1 }
 0x18f   :  { %938 = vst [vmem:[#allocation1 + $0x3] ss:$9 sm:$0xff] %v919_v7  ;;  %v3530_v7 = vrot.slane %v2466_v11, 1 }
 0x190   :  { %942 = vst [vmem:[#allocation1 + $0x5] ss:$9 sm:$0xff] %v921_v63 }
 0x191   :  { %944 = vst [vmem:[#allocation1 + $0x6] ss:$9 sm:$0xff] %v922_v47 }
 0x192   :  { %1080 = vrot.lane.b32.xlu0 %v3524_v31, %s2370_s18 }
 0x193   :  { %1078 = vrot.lane.b32.xlu2 %v3525_v60, %s2370_s18 }
 0x198   :  { %v2790_v51 = vld [vmem:[#allocation1] sm:$0xff] }
 0x199   :  { %3721 = vst [vmem:[#allocation54_spill] sm:$0xff] %v2790_v51  ;;  %v667_v55 = vpop.permute.xlu2 %666 }
 0x19a   :  { %956 = vst [vmem:[#allocation1] ss:$9 sm:$0xff] %v3716_v49  ;;  %1086 = vrot.lane.b32.xlu0 %v3523_v54, %s2370_s18  ;;  %v670_v59 = vperm.slane %v667_v55, %v2794_v61  ;;  %v68_v54 = vrot.slane %v2477_v15, 1 }
 0x19b   :  { %958 = vst [vmem:[#allocation1 + $0x1] ss:$9 sm:$0xff] %v3710_v18 }
 0x19c   :  { %960 = vst [vmem:[#allocation1 + $0x2] ss:$9 sm:$0xff] %v3718_v46 }
 0x19d   :  { %962 = vst [vmem:[#allocation1 + $0x3] ss:$9 sm:$0xff] %v3717_v57 }
 0x19e   :  { %964 = vst [vmem:[#allocation1 + $0x4] ss:$9 sm:$0xff] %v3713_v48  ;;  %v3731_v48 = vrot.slane %v2457_v8, 1 }
 0x19f   :  { %966 = vst [vmem:[#allocation1 + $0x5] ss:$9 sm:$0xff] %v3719_v40 }
 0x1a0   :  { %968 = vst [vmem:[#allocation1 + $0x6] ss:$9 sm:$0xff] %v3720_v37 }
 0x1a1   :  { %970 = vst [vmem:[#allocation1 + $0x7] ss:$9 sm:$0xff] %v3715_v58  ;;  %v979_v62 = vpop.permute.xlu2 %978  ;;  %v3730_v58 = vld [vmem:[#allocation14_spill] sm:$0xff] }
 0x1a2   :  { %673 = vst.msk [vmem:[#allocation5] sm:$0x1] %vm672_vm0, %v670_v59  ;;  %1166 = vrot.lane.b32.xlu0 %v3526_v56, %s2370_s18  ;;  %v1002_v63 = vadd.f32 %v979_v62, %v3722_v27  ;;  %v3723_v59 = vrot.slane %v2459_v9, 1  ;;  %v3527_v56 = vrot.slane %v2464_v10, 1 }
 0x1a4   :  { %v1010_v47 = vadd.f32 %v1002_v63, %v3530_v7 }
 0x1a8   :  { %v971_v44 = vld [vmem:[#allocation1] sm:$0xff] }
 0x1a9   :  { %973 = vperm.xlu1 %2213, %v971_v44   ;;  %1026 = vst [vmem:[#allocation1] ss:$9 sm:$0xff] %v1010_v47  ;;  %v983_v55 = vpop.permute.xlu2 %982  ;;  %v72_v44 = vrot.slane %v2475_v14, 1 }
 0x1aa   :  { %v1004_v31 = vadd.f32 %v983_v55, %v3723_v59  ;;  %v3724_v55 = vrot.slane %v2448_v5, 1 }
 0x1ac   :  { %v1012_v60 = vadd.f32 %v1004_v31, %v68_v54  ;;  %v763_v31 = vadd.s32 4294967288, %v2794_v61 }
 0x1ae   :  { %1030 = vst [vmem:[#allocation1 + $0x2] ss:$9 sm:$0xff] %v1012_v60 }
 0x1b1   :  { %1076 = vrot.lane.b32.xlu1 %v3527_v56, %s2370_s18 }
 0x1b2   :  { %2214 = vset.pattern.permute.xlu1 %v3707_v43 }
 0x1b9   :  { %1082 = vrot.lane.b32.xlu1 %v3528_v0, %s2370_s18 }
 0x1c0   :  { %v692_v62 = vpop.permute.xlu0 %691 }
 0x1c1   :  { %v693_v27 = vperm.slane %v692_v62, %v2794_v61  ;;  %v84_v62 = vrot.slane %v2484_v17, 1 }
 0x1c3   :  { %695 = vst.msk [vmem:[#allocation6] sm:$0x1] %vm672_vm0, %v693_v27  ;;  %v3725_v27 = vrot.slane %v2436_v2, 1 }
 0x1c6   :  { %v786_v60 = vpop.permute.xlu2 %785 }
 0x1c7   :  { %v787_v63 = vperm.slane %v786_v60, %v763_v31  ;;  %v857_v60 = vadd.s32 4294967280, %v2794_v61 }
 0x1c8   :  { %v985_v47 = vpop.permute.xlu0 %984 }
 0x1c9   :  { %789 = vst.msk [vmem:[#allocation6] sm:$0x1] %vm766_vm1, %v787_v63  ;;  %v1005_v59 = vadd.f32 %v985_v47, %v3724_v55 }
 0x1cb   :  { %v1013_v56 = vadd.f32 %v1005_v59, %v72_v44 }
 0x1cd   :  { %1032 = vst [vmem:[#allocation1 + $0x3] ss:$9 sm:$0xff] %v1013_v56  ;;  %v3726_v56 = vld [vmem:[#allocation13_spill] sm:$0xff] }
 0x1ce   :  { %v64_v47 = vrot.slane %v3726_v56, 1 }
 0x1cf   :  { %v762_v0 = vpop.permute.xlu1 %761 }
 0x1d0   :  { %v764_v4 = vperm.slane %v762_v0, %v763_v31  ;;  %v991_v7 = vpop.permute.xlu0 %990  ;;  %v3727_v0 = vrot.slane %v2450_v6, 1 }
 0x1d1   :  { %v1008_v51 = vadd.f32 %v991_v7, %v3725_v27  ;;  %v3728_v7 = vld [vmem:[#allocation27_spill] sm:$0xff]  ;;  %v3729_v27 = vrot.slane %v2431_v1, 1 }
 0x1d2   :  { %767 = vst.msk [vmem:[#allocation5] sm:$0x1] %vm766_vm1, %v764_v4  ;;  %v80_v4 = vrot.slane %v3728_v7, 1 }
 0x1d3   :  { %v1016_v15 = vadd.f32 %v1008_v51, %v84_v62 }
 0x1d5   :  { %1038 = vst [vmem:[#allocation1 + $0x6] ss:$9 sm:$0xff] %v1016_v15  ;;  %v856_v63 = vpop.permute.xlu2 %855 }
 0x1d6   :  { %v858_v14 = vperm.slane %v856_v63, %v857_v60  ;;  %v76_v63 = vrot.slane %v3730_v58, 1 }
 0x1d7   :  { %v981_v40 = vpop.permute.xlu1 %980 }
 0x1d8   :  { %861 = vst.msk [vmem:[#allocation5] sm:$0x1] %vm860_vm2, %v858_v14  ;;  %v1003_v31 = vadd.f32 %v981_v40, %v3727_v0  ;;  %v3732_v40 = vld [vmem:[#allocation17_spill] sm:$0xff] }
 0x1d9   :  { %v88_v0 = vrot.slane %v3732_v40, 1 }
 0x1da   :  { %v1011_v55 = vadd.f32 %v1003_v31, %v64_v47  ;;  %v3733_v31 = vrot.slane %v2468_v12, 1 }
 0x1dc   :  { %1028 = vst [vmem:[#allocation1 + $0x1] ss:$9 sm:$0xff] %v1011_v55 }
 0x1dd   :  { %v989_v59 = vpop.permute.xlu2 %988 }
 0x1de   :  { %v1007_v51 = vadd.f32 %v989_v59, %v3729_v27  ;;  %v3734_v27 = vrot.slane %v2466_v11, 1 }
 0x1df   :  { %v987_v15 = vpop.permute.xlu1 %986 }
 0x1e0   :  { %v1015_v17 = vadd.f32 %v1007_v51, %v80_v4  ;;  %v1006_v14 = vadd.f32 %v987_v15, %v3731_v48 }
 0x1e2   :  { %1036 = vst [vmem:[#allocation1 + $0x5] ss:$9 sm:$0xff] %v1015_v17  ;;  %v1014_v56 = vadd.f32 %v1006_v14, %v76_v63  ;;  %v3735_v17 = vld [vmem:[#allocation31_spill] sm:$0xff] }
 0x1e3   :  { %v116_v48 = vrot.slane %v3735_v17, 1 }
 0x1e4   :  { %1034 = vst [vmem:[#allocation1 + $0x4] ss:$9 sm:$0xff] %v1014_v56 }
 0x1e5   :  { %v1075_v18 = vpop.permute.xlu2 %1074 }
 0x1e7   :  { %v993_v6 = vpop.permute.xlu1 %992 }
 0x1e8   :  { %v1009_v55 = vadd.f32 %v993_v6, %v3733_v31  ;;  %v124_v31 = vrot.slane %v2482_v16, 1 }
 0x1ea   :  { %v1017_v7 = vadd.f32 %v1009_v55, %v88_v0 }
 0x1ec   :  { %1040 = vst [vmem:[#allocation1 + $0x7] ss:$9 sm:$0xff] %v1017_v7  ;;  %v3736_v7 = vrot.slane %v2493_v20, 1 }
 0x1ed   :  { %v1079_v56 = vpop.permute.xlu2 %1078 }
 0x1ee   :  { %v1097_v15 = vadd.f32 %v1075_v18, %v3736_v7 }
 0x1ef   :  { %v1073_v51 = vpop.permute.xlu1 %1072 }
 0x1f3   :  { %v1041_v59 = vld [vmem:[#allocation1] sm:$0xff] }
 0x1f4   :  { %1050 = vst [vmem:[#allocation1] ss:$9 sm:$0xff] %v3734_v27  ;;  %1043 = vperm.xlu2 %2212, %v1041_v59  }
 0x1f5   :  { %1052 = vst [vmem:[#allocation1 + $0x1] ss:$9 sm:$0xff] %v64_v47  ;;  %v128_v47 = vrot.slane %v2528_v30, 1 }
 0x1f6   :  { %1054 = vst [vmem:[#allocation1 + $0x2] ss:$9 sm:$0xff] %v68_v54  ;;  %v3737_v54 = vrot.slane %v2504_v24, 1 }
 0x1f7   :  { %1056 = vst [vmem:[#allocation1 + $0x3] ss:$9 sm:$0xff] %v72_v44 }
 0x1f8   :  { %1058 = vst [vmem:[#allocation1 + $0x4] ss:$9 sm:$0xff] %v76_v63  ;;  %v1099_v44 = vadd.f32 %v1079_v56, %v3737_v54  ;;  %v136_v63 = vrot.slane %v2491_v19, 1  ;;  %v140_v56 = vrot.slane %v2540_v33, 1  ;;  %v152_v54 = vrot.slane %v2552_v36, 1 }
 0x1f9   :  { %1060 = vst [vmem:[#allocation1 + $0x5] ss:$9 sm:$0xff] %v80_v4 }
 0x1fa   :  { %1062 = vst [vmem:[#allocation1 + $0x6] ss:$9 sm:$0xff] %v84_v62  ;;  %v3738_v62 = vrot.slane %v2495_v21, 1  ;;  %v1107_v18 = vadd.f32 %v1099_v44, %v136_v63  ;;  %v3740_v44 = vrot.slane %v2514_v26, 1 }
 0x1fb   :  { %1064 = vst [vmem:[#allocation1 + $0x7] ss:$9 sm:$0xff] %v88_v0  ;;  %v1105_v0 = vadd.f32 %v1097_v15, %v128_v47  ;;  %v3544_v15 = vrot.slane %v2562_v38, 1 }
 0x1fc   :  { %v880_v6 = vpop.permute.xlu0 %879  ;;  %1084 = vrot.lane.b32.xlu2 %v116_v48, %s2370_s18  ;;  %v1096_v4 = vadd.f32 %v1073_v51, %v3738_v62  ;;  %v3739_v51 = vrot.slane %v2502_v23, 1 }
 0x1fd   :  { %v881_v14 = vperm.slane %v880_v6, %v857_v60  ;;  %2215 = vset.pattern.permute.xlu2 %v3706_v53  ;;  %v164_v60 = vrot.slane %v2564_v39, 1 }
 0x1fe   :  { %v1104_v59 = vadd.f32 %v1096_v4, %v124_v31 }
 0x1ff   :  { %883 = vst.msk [vmem:[#allocation6] sm:$0x1] %vm860_vm2, %v881_v14 }
 0x202   :  { %v1065_v55 = vld [vmem:[#allocation1] sm:$0xff] }
 0x203   :  { %1122 = vst [vmem:[#allocation1 + $0x1] ss:$9 sm:$0xff] %v1105_v0  ;;  %1067 = vperm.xlu0 %2209, %v1065_v55   ;;  %v3543_v0 = vrot.slane %v2574_v41, 1  ;;  %v2884_v55 = vadd.s32 4294967272, %v2794_v61 }
 0x204   :  { %1126 = vst [vmem:[#allocation1 + $0x3] ss:$9 sm:$0xff] %v1107_v18  ;;  %v1081_v27 = vpop.permute.xlu0 %1080  ;;  %1170 = vrot.lane.b32.xlu2 %v164_v60, %s2370_s18  ;;  %v3545_v18 = vrot.slane %v3711_v50, 1 }
 0x205   :  { %1120 = vst [vmem:[#allocation1] ss:$9 sm:$0xff] %v1104_v59  ;;  %v1100_v6 = vadd.f32 %v1081_v27, %v3739_v51 }
 0x206   :  { %3741 = vst [vmem:[#allocation59_spill] sm:$0xff] %v2884_v55 }
 0x207   :  { %v1108_v7 = vadd.f32 %v1100_v6, %v140_v56  ;;  %v132_v6 = vrot.slane %v2526_v29, 1 }
 0x209   :  { %1128 = vst [vmem:[#allocation1 + $0x4] ss:$9 sm:$0xff] %v1108_v7  ;;  %v3742_v7 = vrot.slane %v2464_v10, 1 }
 0x20b   :  { %1172 = vrot.lane.b32.xlu0 %v3544_v15, %s2370_s18 }
 0x20c   :  { %v1087_v14 = vpop.permute.xlu0 %1086 }
 0x20d   :  { %v1103_v62 = vadd.f32 %v1087_v14, %v3740_v44 }
 0x20f   :  { %v1111_v4 = vadd.f32 %v1103_v62, %v152_v54 }
 0x211   :  { %1134 = vst [vmem:[#allocation1 + $0x7] ss:$9 sm:$0xff] %v1111_v4  ;;  %v144_v4 = vrot.slane %v2538_v32, 1 }
 0x213   :  { %1178 = vrot.lane.b32.xlu0 %v3543_v0, %s2370_s18  ;;  %v3743_v0 = vrot.slane %v2473_v13, 1 }
 0x21b   :  { %v974_v59 = vpop.permute.xlu1 %973  ;;  %1264 = vrot.lane.b32.xlu0 %v3545_v18, %s2370_s18  ;;  %v2899_v18 = vadd.s32 4294967264, %v2794_v61 }
 0x21c   :  { %v975_v27 = vperm.slane %v974_v59, %v2884_v55  ;;  %v3752_v55 = vrot.slane %v2574_v41, 1 }
 0x21d   :  { %3744 = vst [vmem:[#allocation61_spill] sm:$0xff] %v2899_v18 }
 0x21e   :  { %977 = vst.msk [vmem:[#allocation6] sm:$0x1] %vm954_vm3, %v975_v27 }
 0x223   :  { %v1077_v51 = vpop.permute.xlu1 %1076 }
 0x224   :  { %v1098_v14 = vadd.f32 %v1077_v51, %v3742_v7  ;;  %v148_v51 = vrot.slane %v2500_v22, 1 }
 0x226   :  { %v1106_v44 = vadd.f32 %v1098_v14, %v132_v6 }
 0x228   :  { %1124 = vst [vmem:[#allocation1 + $0x2] ss:$9 sm:$0xff] %v1106_v44 }
 0x22b   :  { %v1083_v62 = vpop.permute.xlu1 %1082 }
 0x22c   :  { %v1101_v59 = vadd.f32 %v1083_v62, %v3743_v0  ;;  %v160_v0 = vrot.slane %v2512_v25, 1 }
 0x22e   :  { %v1109_v15 = vadd.f32 %v1101_v59, %v144_v4 }
 0x230   :  { %1130 = vst [vmem:[#allocation1 + $0x5] ss:$9 sm:$0xff] %v1109_v15  ;;  %v1167_v15 = vpop.permute.xlu0 %1166 }
 0x24e   :  { %v2901_v27 = vpop.permute.xlu2 %1043 }
 0x24f   :  { %3745 = vst [vmem:[#allocation31_spill] sm:$0xff] %v2901_v27 }
 0x256   :  { %v1085_v39 = vpop.permute.xlu2 %1084 }
 0x257   :  { %v1102_v7 = vadd.f32 %v1085_v39, %v116_v48  ;;  %v3746_v39 = vrot.slane %v2550_v35, 1 }
 0x259   :  { %v1110_v14 = vadd.f32 %v1102_v7, %v148_v51  ;;  %v1190_v48 = vadd.f32 %v1167_v15, %v3746_v39 }
 0x25b   :  { %1132 = vst [vmem:[#allocation1 + $0x6] ss:$9 sm:$0xff] %v1110_v14  ;;  %v3748_v14 = vld [vmem:[#allocation35_spill] sm:$0xff] }
 0x25e   :  { %v1171_v62 = vpop.permute.xlu2 %1170 }
 0x262   :  { %v1135_v44 = vld [vmem:[#allocation1] sm:$0xff] }
 0x263   :  { %1144 = vst [vmem:[#allocation1] ss:$9 sm:$0xff] %v124_v31  ;;  %1137 = vperm.xlu1 %2214, %v1135_v44   ;;  %v1192_v31 = vadd.f32 %v1171_v62, %v164_v60  ;;  %v184_v44 = vrot.slane %v3748_v14, 1  ;;  %v3749_v62 = vld [vmem:[#allocation49_spill] sm:$0xff] }
 0x264   :  { %1146 = vst [vmem:[#allocation1 + $0x1] ss:$9 sm:$0xff] %v128_v47  ;;  %v3550_v47 = vrot.slane %v2588_v45, 1  ;;  %v200_v39 = vrot.slane %v3749_v62, 1  ;;  %v3757_v62 = vld [vmem:[#allocation48_spill] sm:$0xff] }
 0x265   :  { %1148 = vst [vmem:[#allocation1 + $0x2] ss:$9 sm:$0xff] %v132_v6 }
 0x266   :  { %1150 = vst [vmem:[#allocation1 + $0x3] ss:$9 sm:$0xff] %v136_v63  ;;  %v3549_v63 = vrot.slane %v2548_v34, 1 }
 0x267   :  { %1152 = vst [vmem:[#allocation1 + $0x4] ss:$9 sm:$0xff] %v140_v56  ;;  %v1198_v56 = vadd.f32 %v1190_v48, %v3550_v47  ;;  %v3750_v48 = vrot.slane %v2562_v38, 1 }
 0x268   :  { %1154 = vst [vmem:[#allocation1 + $0x5] ss:$9 sm:$0xff] %v144_v4  ;;  %v172_v4 = vrot.slane %v2524_v28, 1 }
 0x269   :  { %1156 = vst [vmem:[#allocation1 + $0x6] ss:$9 sm:$0xff] %v148_v51  ;;  %v3747_v51 = vld [vmem:[#allocation43_spill] sm:$0xff] }
 0x26a   :  { %1158 = vst [vmem:[#allocation1 + $0x7] ss:$9 sm:$0xff] %v152_v54  ;;  %v1200_v54 = vadd.f32 %v1192_v31, %v3549_v63  ;;  %v176_v7 = vrot.slane %v3747_v51, 1  ;;  %v3756_v51 = vld [vmem:[#allocation45_spill] sm:$0xff] }
 0x26b   :  { %1168 = vrot.lane.b32.xlu1 %v160_v0, %s2370_s18  ;;  %v192_v14 = vrot.slane %v3756_v51, 1 }
 0x26c   :  { %2217 = vset.pattern.permute.xlu1 %v3706_v53 }
 0x271   :  { %v1159_v6 = vld [vmem:[#allocation1] sm:$0xff] }
 0x272   :  { %1214 = vst [vmem:[#allocation1] ss:$9 sm:$0xff] %v1198_v56  ;;  %1161 = vperm.xlu2 %2215, %v1159_v6   ;;  %v220_v6 = vrot.slane %v3708_v3, 1 }
 0x273   :  { %1218 = vst [vmem:[#allocation1 + $0x2] ss:$9 sm:$0xff] %v1200_v54  ;;  %1174 = vrot.lane.b32.xlu1 %v172_v4, %s2370_s18 }
 0x275   :  { %v1068_v60 = vpop.permute.xlu0 %1067 }
 0x276   :  { %v1069_v59 = vperm.slane %v1068_v60, %v2899_v18  ;;  %v3751_v60 = vld [vmem:[#allocation52_spill] sm:$0xff]  ;;  %v232_v18 = vrot.slane %v3709_v42, 1 }
 0x278   :  { %1071 = vst.msk [vmem:[#allocation6] sm:$0x1] %vm1048_vm4, %v1069_v59  ;;  %v212_v59 = vrot.slane %v3751_v60, 1 }
 0x27a   :  { %1176 = vrot.lane.b32.xlu2 %v176_v7, %s2370_s18 }
 0x27b   :  { %1180 = vrot.lane.b32.xlu1 %v184_v44, %s2370_s18  ;;  %2216 = vset.pattern.permute.xlu2 %v3707_v43 }
 0x27d   :  { %v1173_v15 = vpop.permute.xlu0 %1172 }
 0x27e   :  { %v1193_v31 = vadd.f32 %v1173_v15, %v3750_v48  ;;  %v244_v15 = vrot.slane %v3714_v52, 1  ;;  %v2939_v48 = vadd.s32 4294967256, %v2794_v61  ;;  %v3759_v52 = vrot.slane %v2588_v45, 1 }
 0x280   :  { %v1201_v56 = vadd.f32 %v1193_v31, %v200_v39  ;;  %3753 = vst [vmem:[#allocation65_spill] sm:$0xff] %v2939_v48 }
 0x282   :  { %1220 = vst [vmem:[#allocation1 + $0x3] ss:$9 sm:$0xff] %v1201_v56 }
 0x283   :  { %1260 = vrot.lane.b32.xlu1 %v220_v6, %s2370_s18 }
 0x285   :  { %v1179_v54 = vpop.permute.xlu0 %1178 }
 0x286   :  { %v1196_v63 = vadd.f32 %v1179_v54, %v3752_v55 }
 0x288   :  { %v1204_v47 = vadd.f32 %v1196_v63, %v212_v59  ;;  %v3754_v63 = vld [vmem:[#allocation40_spill] sm:$0xff] }
 0x289   :  { %v208_v54 = vrot.slane %v3754_v63, 1 }
 0x28a   :  { %1226 = vst [vmem:[#allocation1 + $0x6] ss:$9 sm:$0xff] %v1204_v47 }
 0x28b   :  { %1266 = vrot.lane.b32.xlu1 %v232_v18, %s2370_s18 }
 0x293   :  { %1272 = vrot.lane.b32.xlu1 %v244_v15, %s2370_s18 }
 0x2cc   :  { %v1162_v31 = vpop.permute.xlu2 %1161 }
 0x2cd   :  { %v1163_v56 = vperm.slane %v1162_v31, %v2939_v48  ;;  %v3770_v48 = vld [vmem:[#allocation53_spill] sm:$0xff] }
 0x2cf   :  { %1165 = vst.msk [vmem:[#allocation6] sm:$0x1] %vm1142_vm5, %v1163_v56  ;;  %v204_v56 = vrot.slane %v3757_v62, 1 }
 0x2d4   :  { %v1177_v55 = vpop.permute.xlu2 %1176 }
 0x2d5   :  { %v1195_v27 = vadd.f32 %v1177_v55, %v176_v7  ;;  %v2944_v47 = vpop.permute.xlu1 %1137  ;;  %v3758_v55 = vld [vmem:[#allocation51_spill] sm:$0xff] }
 0x2d6   :  { %3755 = vst [vmem:[#allocation66_spill] sm:$0xff] %v2944_v47  ;;  %v216_v63 = vrot.slane %v3758_v55, 1  ;;  %v268_v47 = vrot.slane %v3770_v48, 1 }
 0x2d7   :  { %v1203_v42 = vadd.f32 %v1195_v27, %v208_v54 }
 0x2d9   :  { %1224 = vst [vmem:[#allocation1 + $0x5] ss:$9 sm:$0xff] %v1203_v42 }
 0x2dd   :  { %v1169_v3 = vpop.permute.xlu1 %1168 }
 0x2de   :  { %v1191_v28 = vadd.f32 %v1169_v3, %v160_v0 }
 0x2e0   :  { %v1199_v60 = vadd.f32 %v1191_v28, %v192_v14  ;;  %v3760_v28 = vrot.slane %v2548_v34, 1 }
 0x2e2   :  { %1216 = vst [vmem:[#allocation1 + $0x1] ss:$9 sm:$0xff] %v1199_v60  ;;  %v252_v60 = vrot.slane %v3716_v49, 1 }
 0x2e5   :  { %v1175_v31 = vpop.permute.xlu1 %1174 }
 0x2e6   :  { %v1194_v25 = vadd.f32 %v1175_v31, %v172_v4 }
 0x2e8   :  { %v1202_v36 = vadd.f32 %v1194_v25, %v204_v56  ;;  %v1265_v25 = vpop.permute.xlu0 %1264 }
 0x2ea   :  { %1222 = vst [vmem:[#allocation1 + $0x4] ss:$9 sm:$0xff] %v1202_v36  ;;  %v3761_v36 = vld [vmem:[#allocation55_spill] sm:$0xff] }
 0x2eb   :  { %v224_v0 = vrot.slane %v3761_v36, 1 }
 0x2ed   :  { %v1181_v7 = vpop.permute.xlu1 %1180 }
 0x2ee   :  { %v1197_v33 = vadd.f32 %v1181_v7, %v184_v44  ;;  %v3567_v44 = vrot.slane %v3717_v57, 1 }
 0x2f0   :  { %v1205_v22 = vadd.f32 %v1197_v33, %v216_v63 }
 0x2f2   :  { %1228 = vst [vmem:[#allocation1 + $0x7] ss:$9 sm:$0xff] %v1205_v22  ;;  %v3762_v22 = vrot.slane %v3711_v50, 1 }
 0x2f4   :  { %v1286_v33 = vadd.f32 %v1265_v25, %v3762_v22  ;;  %v2975_v25 = vld [vmem:[#allocation2] sm:$0xf] }
 0x2f5   :  { %v1261_v27 = vpop.permute.xlu1 %1260  ;;  %3766 = vst [vmem:[#allocation45_spill] sm:$0xff] %v2975_v25  ;;  %v282_v22 = vrot.slane %v2975_v25, 2 }
 0x2f6   :  { %v1284_v4 = vadd.f32 %v1261_v27, %v220_v6  ;;  %v3763_v6 = vld [vmem:[#allocation58_spill] sm:$0xff] }
 0x2f7   :  { %v236_v27 = vrot.slane %v3763_v6, 1 }
 0x2f8   :  { %v1292_v7 = vadd.f32 %v1284_v4, %v252_v60  ;;  %v286_v4 = vrot.slane %v2459_v9, 2 }
 0x2f9   :  { %v1229_v42 = vld [vmem:[#allocation1] sm:$0xff] }
 0x2fa   :  { %1238 = vst [vmem:[#allocation1] ss:$9 sm:$0xff] %v3759_v52  ;;  %1231 = vperm.xlu2 %2216, %v1229_v42  }
 0x2fb   :  { %1240 = vst [vmem:[#allocation1 + $0x1] ss:$9 sm:$0xff] %v192_v14  ;;  %v3568_v14 = vrot.slane %v3718_v46, 1 }
 0x2fc   :  { %1242 = vst [vmem:[#allocation1 + $0x2] ss:$9 sm:$0xff] %v3760_v28  ;;  %v3765_v28 = vld [vmem:[#allocation60_spill] sm:$0xff] }
 0x2fd   :  { %1244 = vst [vmem:[#allocation1 + $0x3] ss:$9 sm:$0xff] %v200_v39  ;;  %v1267_v3 = vpop.permute.xlu1 %1266 }
 0x2fe   :  { %1246 = vst [vmem:[#allocation1 + $0x4] ss:$9 sm:$0xff] %v204_v56  ;;  %v1287_v52 = vadd.f32 %v1267_v3, %v232_v18  ;;  %v248_v3 = vrot.slane %v3765_v28, 1 }
 0x2ff   :  { %1248 = vst [vmem:[#allocation1 + $0x5] ss:$9 sm:$0xff] %v208_v54  ;;  %v3566_v54 = vrot.slane %v3720_v37, 1 }
 0x300   :  { %1250 = vst [vmem:[#allocation1 + $0x6] ss:$9 sm:$0xff] %v212_v59  ;;  %v1295_v31 = vadd.f32 %v1287_v52, %v3567_v44  ;;  %v294_v52 = vrot.slane %v2436_v2, 2 }
 0x301   :  { %1252 = vst [vmem:[#allocation1 + $0x7] ss:$9 sm:$0xff] %v216_v63  ;;  %v1294_v63 = vadd.f32 %v1286_v33, %v3568_v14  ;;  %v288_v33 = vrot.slane %v2448_v5, 2  ;;  %v3771_v5 = vld [vmem:[#allocation56_spill] sm:$0xff] }
 0x302   :  { %1262 = vrot.lane.b32.xlu2 %v224_v0, %s2370_s18 }
 0x305   :  { %v1273_v39 = vpop.permute.xlu1 %1272 }
 0x306   :  { %v1290_v59 = vadd.f32 %v1273_v39, %v244_v15  ;;  %v3764_v15 = vld [vmem:[#allocation57_spill] sm:$0xff]  ;;  %v292_v39 = vrot.slane %v2431_v1, 2 }
 0x307   :  { %v240_v42 = vrot.slane %v3764_v15, 1  ;;  %v280_v15 = vrot.slane %v3771_v5, 1 }
 0x308   :  { %v1253_v56 = vld [vmem:[#allocation1] sm:$0xff]  ;;  %v1298_v18 = vadd.f32 %v1290_v59, %v3566_v54  ;;  %v2988_v59 = vadd.s32 4294967248, %v2794_v61 }
 0x309   :  { %1312 = vst [vmem:[#allocation1 + $0x2] ss:$9 sm:$0xff] %v1294_v63  ;;  %1255 = vperm.xlu0 %2209, %v1253_v56  }
 0x30a   :  { %1308 = vst [vmem:[#allocation1] ss:$9 sm:$0xff] %v1292_v7  ;;  %1268 = vrot.lane.b32.xlu2 %v236_v27, %s2370_s18  ;;  %v3769_v7 = vld [vmem:[#allocation50_spill] sm:$0xff] }
 0x30b   :  { %1314 = vst [vmem:[#allocation1 + $0x3] ss:$9 sm:$0xff] %v1295_v31 }
 0x30c   :  { %1320 = vst [vmem:[#allocation1 + $0x6] ss:$9 sm:$0xff] %v1298_v18  ;;  %v256_v18 = vrot.slane %v3769_v7, 1 }
 0x30d   :  { %3767 = vst [vmem:[#allocation48_spill] sm:$0xff] %v2988_v59 }
 0x311   :  { %1270 = vrot.lane.b32.xlu0 %v240_v42, %s2370_s18 }
 0x312   :  { %1274 = vrot.lane.b32.xlu2 %v248_v3, %s2370_s18 }
 0x319   :  { %1360 = vrot.lane.b32.xlu0 %v288_v33, %s2370_s18 }
 0x31a   :  { %1354 = vrot.lane.b32.xlu2 %v282_v22, %s2370_s18 }
 0x321   :  { %1366 = vrot.lane.b32.xlu0 %v294_v52, %s2370_s18 }
 0x322   :  { %1358 = vrot.lane.b32.xlu2 %v286_v4, %s2370_s18 }
 0x32a   :  { %1364 = vrot.lane.b32.xlu2 %v292_v39, %s2370_s18 }
 0x354   :  { %v2990_v63 = vpop.permute.xlu2 %1231 }
 0x355   :  { %3768 = vst [vmem:[#allocation51_spill] sm:$0xff] %v2990_v63 }
 0x35c   :  { %v1263_v56 = vpop.permute.xlu2 %1262 }
 0x35d   :  { %v1285_v54 = vadd.f32 %v1263_v56, %v224_v0 }
 0x35f   :  { %v1293_v44 = vadd.f32 %v1285_v54, %v256_v18  ;;  %v3772_v54 = vld [vmem:[#allocation64_spill] sm:$0xff] }
 0x360   :  { %v272_v56 = vrot.slane %v3772_v54, 1 }
 0x361   :  { %1310 = vst [vmem:[#allocation1 + $0x1] ss:$9 sm:$0xff] %v1293_v44 }
 0x364   :  { %v1269_v14 = vpop.permute.xlu2 %1268 }
 0x365   :  { %v1288_v1 = vadd.f32 %v1269_v14, %v236_v27 }
 0x367   :  { %v1296_v2 = vadd.f32 %v1288_v1, %v268_v47 }
 0x369   :  { %1316 = vst [vmem:[#allocation1 + $0x4] ss:$9 sm:$0xff] %v1296_v2 }
 0x36c   :  { %v1275_v9 = vpop.permute.xlu2 %1274 }
 0x36d   :  { %v1291_v25 = vadd.f32 %v1275_v9, %v248_v3  ;;  %v3774_v9 = vrot.slane %v3718_v46, 1  ;;  %v3776_v3 = vrot.slane %v3720_v37, 1 }
 0x36f   :  { %v1299_v28 = vadd.f32 %v1291_v25, %v280_v15 }
 0x371   :  { %1322 = vst [vmem:[#allocation1 + $0x7] ss:$9 sm:$0xff] %v1299_v28  ;;  %v3775_v28 = vrot.slane %v3717_v57, 1 }
 0x374   :  { %v1355_v44 = vpop.permute.xlu2 %1354 }
 0x375   :  { %v1378_v25 = vadd.f32 %v1355_v44, %v282_v22  ;;  %v324_v44 = vrot.slane %v2473_v13, 2 }
 0x37b   :  { %v1256_v31 = vpop.permute.xlu0 %1255 }
 0x37c   :  { %v1257_v63 = vperm.slane %v1256_v31, %v2988_v59  ;;  %v1359_v1 = vpop.permute.xlu2 %1358  ;;  %v298_v31 = vrot.slane %v2466_v11, 2 }
 0x37e   :  { %1259 = vst.msk [vmem:[#allocation6] sm:$0x1] %vm1236_vm6, %v1257_v63  ;;  %v1380_v63 = vadd.f32 %v1359_v1, %v286_v4  ;;  %v1386_v59 = vadd.f32 %v1378_v25, %v298_v31 }
 0x383   :  { %v1271_v0 = vpop.permute.xlu0 %1270 }
 0x384   :  { %v1289_v48 = vadd.f32 %v1271_v0, %v240_v42  ;;  %v3777_v0 = vld [vmem:[#allocation24_spill] sm:$0xff] }
 0x386   :  { %v1297_v14 = vadd.f32 %v1289_v48, %v272_v56  ;;  %v1365_v48 = vpop.permute.xlu2 %1364 }
 0x388   :  { %1318 = vst [vmem:[#allocation1 + $0x5] ss:$9 sm:$0xff] %v1297_v14  ;;  %v302_v14 = vrot.slane %v3777_v0, 2 }
 0x38a   :  { %v1388_v54 = vadd.f32 %v1380_v63, %v302_v14 }
 0x38b   :  { %v1361_v2 = vpop.permute.xlu0 %1360 }
 0x38f   :  { %v3000_v27 = vld [vmem:[#allocation1] sm:$0xff] }
 0x390   :  { %3773 = vst [vmem:[#allocation55_spill] sm:$0xff] %v3000_v27  ;;  %v3778_v27 = vld [vmem:[#allocation27_spill] sm:$0xff] }
 0x391   :  { %1332 = vst [vmem:[#allocation1] ss:$9 sm:$0xff] %v252_v60  ;;  %v1383_v60 = vadd.f32 %v1365_v48, %v292_v39  ;;  %v290_v39 = vrot.slane %v2457_v8, 2 }
 0x392   :  { %1334 = vst [vmem:[#allocation1 + $0x1] ss:$9 sm:$0xff] %v256_v18 }
 0x393   :  { %1336 = vst [vmem:[#allocation1 + $0x2] ss:$9 sm:$0xff] %v3774_v9  ;;  %v1367_v42 = vpop.permute.xlu0 %1366  ;;  %v1381_v9 = vadd.f32 %v1361_v2, %v288_v33 }
 0x394   :  { %1338 = vst [vmem:[#allocation1 + $0x3] ss:$9 sm:$0xff] %v3775_v28  ;;  %v1384_v18 = vadd.f32 %v1367_v42, %v294_v52  ;;  %v308_v28 = vrot.slane %v3778_v27, 2  ;;  %v3781_v52 = vld [vmem:[#allocation16_spill] sm:$0xff]  ;;  %v3783_v42 = vld [vmem:[#allocation13_spill] sm:$0xff] }
 0x395   :  { %1340 = vst [vmem:[#allocation1 + $0x4] ss:$9 sm:$0xff] %v268_v47  ;;  %v3779_v47 = vld [vmem:[#allocation26_spill] sm:$0xff]  ;;  %v284_v33 = vrot.slane %v3781_v52, 2  ;;  %v300_v25 = vrot.slane %v3783_v42, 2 }
 0x396   :  { %1342 = vst [vmem:[#allocation1 + $0x5] ss:$9 sm:$0xff] %v272_v56  ;;  %v310_v56 = vrot.slane %v3779_v47, 2  ;;  %v1391_v5 = vadd.f32 %v1383_v60, %v308_v28 }
 0x397   :  { %1344 = vst [vmem:[#allocation1 + $0x6] ss:$9 sm:$0xff] %v3776_v3  ;;  %v3780_v3 = vld [vmem:[#allocation23_spill] sm:$0xff] }
 0x398   :  { %1346 = vst [vmem:[#allocation1 + $0x7] ss:$9 sm:$0xff] %v280_v15  ;;  %v304_v15 = vrot.slane %v3780_v3, 2  ;;  %v1392_v22 = vadd.f32 %v1384_v18, %v310_v56 }
 0x39a   :  { %v1389_v4 = vadd.f32 %v1381_v9, %v304_v15  ;;  %v306_v9 = vrot.slane %v3730_v58, 2 }
 0x39f   :  { %v1347_v46 = vld [vmem:[#allocation1] sm:$0xff] }
 0x3a0   :  { %1402 = vst [vmem:[#allocation1] ss:$9 sm:$0xff] %v1386_v59  ;;  %1349 = vperm.xlu1 %2217, %v1347_v46   ;;  %v296_v59 = vrot.slane %v2468_v12, 2  ;;  %v314_v46 = vrot.slane %v2495_v21, 2 }
 0x3a1   :  { %1406 = vst [vmem:[#allocation1 + $0x2] ss:$9 sm:$0xff] %v1388_v54  ;;  %v3027_v54 = vadd.s32 4294967240, %v2794_v61 }
 0x3a2   :  { %1412 = vst [vmem:[#allocation1 + $0x5] ss:$9 sm:$0xff] %v1391_v5  ;;  %v318_v5 = vrot.slane %v2464_v10, 2  ;;  %v312_v10 = vrot.slane %v3732_v40, 2 }
 0x3a3   :  { %1408 = vst [vmem:[#allocation1 + $0x3] ss:$9 sm:$0xff] %v1389_v4 }
 0x3a4   :  { %1414 = vst [vmem:[#allocation1 + $0x6] ss:$9 sm:$0xff] %v1392_v22 }
 0x3a5   :  { %3782 = vst [vmem:[#allocation58_spill] sm:$0xff] %v3027_v54 }
 0x3a8   :  { %1356 = vrot.lane.b32.xlu1 %v284_v33, %s2370_s18 }
 0x3a9   :  { %2218 = vset.pattern.permute.xlu1 %v3707_v43 }
 0x3b0   :  { %1362 = vrot.lane.b32.xlu1 %v290_v39, %s2370_s18 }
 0x3b8   :  { %1368 = vrot.lane.b32.xlu1 %v296_v59, %s2370_s18 }
 0x3c0   :  { %1448 = vrot.lane.b32.xlu1 %v314_v46, %s2370_s18 }
 0x3c8   :  { %1452 = vrot.lane.b32.xlu1 %v318_v5, %s2370_s18 }
 0x3d0   :  { %1458 = vrot.lane.b32.xlu1 %v324_v44, %s2370_s18 }
 0x412   :  { %v1350_v1 = vpop.permute.xlu1 %1349 }
 0x413   :  { %v1351_v2 = vperm.slane %v1350_v1, %v3027_v54 }
 0x415   :  { %1353 = vst.msk [vmem:[#allocation6] sm:$0x1] %vm1330_vm7, %v1351_v2 }
 0x41a   :  { %v1357_v48 = vpop.permute.xlu1 %1356 }
 0x41b   :  { %v1379_v63 = vadd.f32 %v1357_v48, %v284_v33 }
 0x41d   :  { %v1387_v60 = vadd.f32 %v1379_v63, %v300_v25  ;;  %v346_v63 = vrot.slane %v2550_v35, 2 }
 0x41f   :  { %1404 = vst [vmem:[#allocation1 + $0x1] ss:$9 sm:$0xff] %v1387_v60  ;;  %v352_v60 = vrot.slane %v2562_v38, 2 }
 0x422   :  { %v1363_v18 = vpop.permute.xlu1 %1362 }
 0x423   :  { %v1382_v22 = vadd.f32 %v1363_v18, %v290_v39  ;;  %v316_v39 = vrot.slane %v2493_v20, 2  ;;  %v358_v18 = vrot.slane %v2574_v41, 2 }
 0x425   :  { %v1390_v4 = vadd.f32 %v1382_v22, %v306_v9 }
 0x427   :  { %1410 = vst [vmem:[#allocation1 + $0x4] ss:$9 sm:$0xff] %v1390_v4 }
 0x42a   :  { %v1369_v13 = vpop.permute.xlu1 %1368 }
 0x42b   :  { %v1385_v12 = vadd.f32 %v1369_v13, %v296_v59 }
 0x42d   :  { %v1393_v8 = vadd.f32 %v1385_v12, %v312_v10  ;;  %v330_v12 = vrot.slane %v2482_v16, 2 }
 0x42f   :  { %1416 = vst [vmem:[#allocation1 + $0x7] ss:$9 sm:$0xff] %v1393_v8  ;;  %v3591_v8 = vrot.slane %v2526_v29, 2 }
 0x432   :  { %v1449_v1 = vpop.permute.xlu1 %1448 }
 0x433   :  { %v1472_v13 = vadd.f32 %v1449_v1, %v314_v46  ;;  %v320_v46 = vrot.slane %v2504_v24, 2 }
 0x436   :  { %v1417_v2 = vld [vmem:[#allocation1] sm:$0xff] }
 0x437   :  { %1426 = vst [vmem:[#allocation1] ss:$9 sm:$0xff] %v298_v31  ;;  %1419 = vperm.xlu2 %2216, %v1417_v2   ;;  %v332_v2 = vrot.slane %v2528_v30, 2 }
 0x438   :  { %1428 = vst [vmem:[#allocation1 + $0x1] ss:$9 sm:$0xff] %v300_v25  ;;  %v326_v25 = vrot.slane %v3735_v17, 2 }
 0x439   :  { %1430 = vst [vmem:[#allocation1 + $0x2] ss:$9 sm:$0xff] %v302_v14 }
 0x43a   :  { %1432 = vst [vmem:[#allocation1 + $0x3] ss:$9 sm:$0xff] %v304_v15  ;;  %v1453_v33 = vpop.permute.xlu1 %1452  ;;  %v1480_v15 = vadd.f32 %v1472_v13, %v330_v12 }
 0x43b   :  { %1434 = vst [vmem:[#allocation1 + $0x4] ss:$9 sm:$0xff] %v306_v9  ;;  %v1474_v48 = vadd.f32 %v1453_v33, %v318_v5  ;;  %v322_v5 = vrot.slane %v2502_v23, 2  ;;  %v3059_v9 = vadd.s32 4294967232, %v2794_v61 }
 0x43c   :  { %1436 = vst [vmem:[#allocation1 + $0x5] ss:$9 sm:$0xff] %v308_v28  ;;  %v3590_v28 = vrot.slane %v2538_v32, 2 }
 0x43d   :  { %1438 = vst [vmem:[#allocation1 + $0x6] ss:$9 sm:$0xff] %v310_v56  ;;  %v1482_v14 = vadd.f32 %v1474_v48, %v3591_v8 }
 0x43e   :  { %1440 = vst [vmem:[#allocation1 + $0x7] ss:$9 sm:$0xff] %v312_v10 }
 0x43f   :  { %1450 = vrot.lane.b32.xlu2 %v316_v39, %s2370_s18  ;;  %3784 = vst [vmem:[#allocation50_spill] sm:$0xff] %v3059_v9 }
 0x440   :  { %2219 = vset.pattern.permute.xlu2 %v3706_v53 }
 0x442   :  { %v1459_v31 = vpop.permute.xlu1 %1458 }
 0x443   :  { %v1477_v56 = vadd.f32 %v1459_v31, %v324_v44  ;;  %v328_v44 = vrot.slane %v2514_v26, 2  ;;  %v336_v31 = vrot.slane %v2491_v19, 2  ;;  %v3803_v19 = vld [vmem:[#allocation40_spill] sm:$0xff] }
 0x444   :  { %v372_v30 = vrot.slane %v3803_v19, 2 }
 0x445   :  { %v1441_v59 = vld [vmem:[#allocation1] sm:$0xff]  ;;  %v1485_v10 = vadd.f32 %v1477_v56, %v3590_v28 }
 0x446   :  { %1496 = vst [vmem:[#allocation1] ss:$9 sm:$0xff] %v1480_v15  ;;  %1443 = vperm.xlu0 %2209, %v1441_v59   ;;  %v3786_v59 = vld [vmem:[#allocation29_spill] sm:$0xff] }
 0x447   :  { %1500 = vst [vmem:[#allocation1 + $0x2] ss:$9 sm:$0xff] %v1482_v14  ;;  %1454 = vrot.lane.b32.xlu2 %v320_v46, %s2370_s18 }
 0x448   :  { %1506 = vst [vmem:[#allocation1 + $0x5] ss:$9 sm:$0xff] %v1485_v10  ;;  %v342_v10 = vrot.slane %v3786_v59, 2 }
 0x44e   :  { %1456 = vrot.lane.b32.xlu0 %v322_v5, %s2370_s18 }
 0x44f   :  { %1460 = vrot.lane.b32.xlu2 %v326_v25, %s2370_s18 }
 0x456   :  { %1462 = vrot.lane.b32.xlu0 %v328_v44, %s2370_s18 }
 0x45e   :  { %1542 = vrot.lane.b32.xlu0 %v346_v63, %s2370_s18 }
 0x466   :  { %1548 = vrot.lane.b32.xlu0 %v352_v60, %s2370_s18 }
 0x46e   :  { %1554 = vrot.lane.b32.xlu0 %v358_v18, %s2370_s18 }
 0x491   :  { %v3061_v22 = vpop.permute.xlu2 %1419 }
 0x492   :  { %3785 = vst [vmem:[#allocation24_spill] sm:$0xff] %v3061_v22 }
 0x499   :  { %v1451_v1 = vpop.permute.xlu2 %1450 }
 0x49a   :  { %v1473_v33 = vadd.f32 %v1451_v1, %v316_v39  ;;  %v3787_v1 = vld [vmem:[#allocation37_spill] sm:$0xff] }
 0x49c   :  { %v1481_v48 = vadd.f32 %v1473_v33, %v332_v2  ;;  %v338_v33 = vrot.slane %v3787_v1, 2 }
 0x49e   :  { %1498 = vst [vmem:[#allocation1 + $0x1] ss:$9 sm:$0xff] %v1481_v48 }
 0x4a1   :  { %v1455_v13 = vpop.permute.xlu2 %1454 }
 0x4a2   :  { %v1475_v14 = vadd.f32 %v1455_v13, %v320_v46  ;;  %v3788_v13 = vld [vmem:[#allocation39_spill] sm:$0xff] }
 0x4a4   :  { %v1483_v56 = vadd.f32 %v1475_v14, %v336_v31  ;;  %v344_v14 = vrot.slane %v3788_v13, 2 }
 0x4a6   :  { %1502 = vst [vmem:[#allocation1 + $0x3] ss:$9 sm:$0xff] %v1483_v56 }
 0x4a9   :  { %v1461_v15 = vpop.permute.xlu2 %1460 }
 0x4aa   :  { %v1478_v28 = vadd.f32 %v1461_v15, %v326_v25  ;;  %v3789_v25 = vrot.slane %v2526_v29, 2 }
 0x4ac   :  { %v1486_v8 = vadd.f32 %v1478_v28, %v342_v10 }
 0x4ae   :  { %1508 = vst [vmem:[#allocation1 + $0x6] ss:$9 sm:$0xff] %v1486_v8 }
 0x4b8   :  { %v1444_v4 = vpop.permute.xlu0 %1443 }
 0x4b9   :  { %v1445_v22 = vperm.slane %v1444_v4, %v3059_v9  ;;  %v366_v9 = vrot.slane %v2548_v34, 2 }
 0x4bb   :  { %1447 = vst.msk [vmem:[#allocation6] sm:$0x1] %vm1424_vm8, %v1445_v22 }
 0x4c0   :  { %v1457_v39 = vpop.permute.xlu0 %1456 }
 0x4c1   :  { %v1476_v48 = vadd.f32 %v1457_v39, %v322_v5  ;;  %v3790_v5 = vrot.slane %v2538_v32, 2 }
 0x4c3   :  { %v1484_v54 = vadd.f32 %v1476_v48, %v338_v33 }
 0x4c5   :  { %1504 = vst [vmem:[#allocation1 + $0x4] ss:$9 sm:$0xff] %v1484_v54  ;;  %v3791_v54 = vld [vmem:[#allocation30_spill] sm:$0xff] }
 0x4c6   :  { %v348_v4 = vrot.slane %v3791_v54, 2 }
 0x4c8   :  { %v1463_v46 = vpop.permute.xlu0 %1462 }
 0x4c9   :  { %v1479_v56 = vadd.f32 %v1463_v46, %v328_v44 }
 0x4cb   :  { %v1487_v59 = vadd.f32 %v1479_v56, %v344_v14 }
 0x4cd   :  { %1510 = vst [vmem:[#allocation1 + $0x7] ss:$9 sm:$0xff] %v1487_v59  ;;  %v362_v59 = vrot.slane %v2588_v45, 2 }
 0x4d0   :  { %v1543_v28 = vpop.permute.xlu0 %1542 }
 0x4d1   :  { %v1566_v15 = vadd.f32 %v1543_v28, %v346_v63  ;;  %v3795_v28 = vld [vmem:[#allocation41_spill] sm:$0xff] }
 0x4d3   :  { %v1574_v46 = vadd.f32 %v1566_v15, %v362_v59 }
 0x4d4   :  { %v1511_v8 = vld [vmem:[#allocation1] sm:$0xff] }
 0x4d5   :  { %1520 = vst [vmem:[#allocation1] ss:$9 sm:$0xff] %v330_v12  ;;  %1513 = vperm.xlu1 %2218, %v1511_v8   ;;  %v3792_v12 = vld [vmem:[#allocation49_spill] sm:$0xff]  ;;  %v350_v8 = vrot.slane %v3795_v28, 2 }
 0x4d6   :  { %1522 = vst [vmem:[#allocation1 + $0x1] ss:$9 sm:$0xff] %v332_v2  ;;  %v3595_v2 = vrot.slane %v3792_v12, 2 }
 0x4d7   :  { %1524 = vst [vmem:[#allocation1 + $0x2] ss:$9 sm:$0xff] %v3789_v25  ;;  %v3796_v25 = vld [vmem:[#allocation35_spill] sm:$0xff] }
 0x4d8   :  { %1526 = vst [vmem:[#allocation1 + $0x3] ss:$9 sm:$0xff] %v336_v31  ;;  %v1549_v22 = vpop.permute.xlu0 %1548 }
 0x4d9   :  { %1528 = vst [vmem:[#allocation1 + $0x4] ss:$9 sm:$0xff] %v338_v33  ;;  %v1569_v44 = vadd.f32 %v1549_v22, %v352_v60  ;;  %v3793_v33 = vld [vmem:[#allocation52_spill] sm:$0xff]  ;;  %v360_v22 = vrot.slane %v3796_v25, 2 }
 0x4da   :  { %1530 = vst [vmem:[#allocation1 + $0x5] ss:$9 sm:$0xff] %v3790_v5  ;;  %v3594_v48 = vrot.slane %v3793_v33, 2 }
 0x4db   :  { %1532 = vst [vmem:[#allocation1 + $0x6] ss:$9 sm:$0xff] %v342_v10  ;;  %v1577_v39 = vadd.f32 %v1569_v44, %v3595_v2  ;;  %v3798_v44 = vld [vmem:[#allocation42_spill] sm:$0xff] }
 0x4dc   :  { %1534 = vst [vmem:[#allocation1 + $0x7] ss:$9 sm:$0xff] %v344_v14  ;;  %v3794_v14 = vld [vmem:[#allocation32_spill] sm:$0xff]  ;;  %v378_v15 = vrot.slane %v3798_v44, 2 }
 0x4dd   :  { %1544 = vrot.lane.b32.xlu1 %v348_v4, %s2370_s18  ;;  %v354_v63 = vrot.slane %v3794_v14, 2 }
 0x4de   :  { %2221 = vset.pattern.permute.xlu1 %v3706_v53 }
 0x4e0   :  { %v1555_v31 = vpop.permute.xlu0 %1554 }
 0x4e1   :  { %v1572_v10 = vadd.f32 %v1555_v31, %v358_v18  ;;  %v3797_v18 = vld [vmem:[#allocation43_spill] sm:$0xff]  ;;  %v3799_v31 = vld [vmem:[#allocation44_spill] sm:$0xff] }
 0x4e2   :  { %v356_v5 = vrot.slane %v3797_v18, 2 }
 0x4e3   :  { %v1535_v56 = vld [vmem:[#allocation1] sm:$0xff]  ;;  %v1580_v60 = vadd.f32 %v1572_v10, %v3594_v48  ;;  %v3800_v10 = vld [vmem:[#allocation47_spill] sm:$0xff] }
 0x4e4   :  { %1590 = vst [vmem:[#allocation1] ss:$9 sm:$0xff] %v1574_v46  ;;  %1537 = vperm.xlu2 %2219, %v1535_v56   ;;  %v390_v46 = vrot.slane %v3800_v10, 2  ;;  %v3102_v56 = vadd.s32 4294967224, %v2794_v61 }
 0x4e5   :  { %1596 = vst [vmem:[#allocation1 + $0x3] ss:$9 sm:$0xff] %v1577_v39  ;;  %1550 = vrot.lane.b32.xlu1 %v354_v63, %s2370_s18  ;;  %v384_v39 = vrot.slane %v3799_v31, 2 }
 0x4e6   :  { %1602 = vst [vmem:[#allocation1 + $0x6] ss:$9 sm:$0xff] %v1580_v60 }
 0x4e7   :  { %3801 = vst [vmem:[#allocation27_spill] sm:$0xff] %v3102_v56 }
 0x4ec   :  { %1546 = vrot.lane.b32.xlu2 %v350_v8, %s2370_s18 }
 0x4ed   :  { %1556 = vrot.lane.b32.xlu1 %v360_v22, %s2370_s18  ;;  %2220 = vset.pattern.permute.xlu2 %v3707_v43 }
 0x4f4   :  { %1552 = vrot.lane.b32.xlu2 %v356_v5, %s2370_s18 }
 0x4f5   :  { %1636 = vrot.lane.b32.xlu1 %v378_v15, %s2370_s18 }
 0x4fd   :  { %1642 = vrot.lane.b32.xlu1 %v384_v39, %s2370_s18 }
 0x505   :  { %1648 = vrot.lane.b32.xlu1 %v390_v46, %s2370_s18 }
 0x53e   :  { %v1538_v60 = vpop.permute.xlu2 %1537 }
 0x53f   :  { %v1539_v48 = vperm.slane %v1538_v60, %v3102_v56  ;;  %v364_v60 = vrot.slane %v3756_v51, 2 }
 0x541   :  { %1541 = vst.msk [vmem:[#allocation6] sm:$0x1] %vm1518_vm9, %v1539_v48 }
 0x546   :  { %v1547_v2 = vpop.permute.xlu2 %1546 }
 0x547   :  { %v1568_v45 = vadd.f32 %v1547_v2, %v350_v8  ;;  %v3107_v29 = vpop.permute.xlu1 %1513  ;;  %v370_v8 = vrot.slane %v3757_v62, 2 }
 0x548   :  { %3802 = vst [vmem:[#allocation26_spill] sm:$0xff] %v3107_v29 }
 0x549   :  { %v1576_v13 = vadd.f32 %v1568_v45, %v366_v9 }
 0x54b   :  { %1594 = vst [vmem:[#allocation1 + $0x2] ss:$9 sm:$0xff] %v1576_v13  ;;  %v376_v13 = vrot.slane %v3758_v55, 2 }
 0x54e   :  { %v1553_v1 = vpop.permute.xlu2 %1552 }
 0x54f   :  { %v1571_v16 = vadd.f32 %v1553_v1, %v356_v5  ;;  %v1545_v53 = vpop.permute.xlu1 %1544 }
 0x550   :  { %v1567_v40 = vadd.f32 %v1545_v53, %v348_v4 }
 0x551   :  { %v1579_v48 = vadd.f32 %v1571_v16, %v372_v30  ;;  %v3804_v16 = vrot.slane %v3792_v12, 2 }
 0x552   :  { %v1575_v58 = vadd.f32 %v1567_v40, %v364_v60 }
 0x553   :  { %1600 = vst [vmem:[#allocation1 + $0x5] ss:$9 sm:$0xff] %v1579_v48  ;;  %v3806_v48 = vld [vmem:[#allocation60_spill] sm:$0xff] }
 0x554   :  { %1592 = vst [vmem:[#allocation1 + $0x1] ss:$9 sm:$0xff] %v1575_v58  ;;  %v380_v58 = vrot.slane %v3761_v36, 2 }
 0x557   :  { %v1551_v2 = vpop.permute.xlu1 %1550 }
 0x558   :  { %v1570_v34 = vadd.f32 %v1551_v2, %v354_v63  ;;  %v392_v2 = vrot.slane %v3806_v48, 2 }
 0x55a   :  { %v1578_v42 = vadd.f32 %v1570_v34, %v370_v8  ;;  %v3805_v34 = vrot.slane %v3793_v33, 2 }
 0x55c   :  { %1598 = vst [vmem:[#allocation1 + $0x4] ss:$9 sm:$0xff] %v1578_v42  ;;  %v3626_v42 = vrot.slane %v3717_v57, 2 }
 0x55f   :  { %v1557_v45 = vpop.permute.xlu1 %1556 }
 0x560   :  { %v1573_v32 = vadd.f32 %v1557_v45, %v360_v22  ;;  %v3808_v45 = vld [vmem:[#allocation57_spill] sm:$0xff] }
 0x562   :  { %v1581_v56 = vadd.f32 %v1573_v32, %v376_v13 }
 0x564   :  { %1604 = vst [vmem:[#allocation1 + $0x7] ss:$9 sm:$0xff] %v1581_v56 }
 0x567   :  { %v1637_v1 = vpop.permute.xlu1 %1636 }
 0x568   :  { %v1660_v40 = vadd.f32 %v1637_v1, %v378_v15  ;;  %v386_v15 = vrot.slane %v3763_v6, 2  ;;  %v3809_v1 = vld [vmem:[#allocation15_spill] sm:$0xff] }
 0x56b   :  { %v1605_v5 = vld [vmem:[#allocation1] sm:$0xff] }
 0x56c   :  { %1614 = vst [vmem:[#allocation1] ss:$9 sm:$0xff] %v362_v59  ;;  %1607 = vperm.xlu2 %2220, %v1605_v5   ;;  %v3625_v59 = vrot.slane %v3720_v37, 2  ;;  %v3616_v5 = vrot.slane %v3809_v1, 3 }
 0x56d   :  { %1616 = vst [vmem:[#allocation1 + $0x1] ss:$9 sm:$0xff] %v364_v60  ;;  %v3631_v60 = vrot.slane %v3711_v50, 2 }
 0x56e   :  { %1618 = vst [vmem:[#allocation1 + $0x2] ss:$9 sm:$0xff] %v366_v9  ;;  %v3629_v9 = vrot.slane %v3716_v49, 2 }
 0x56f   :  { %1620 = vst [vmem:[#allocation1 + $0x3] ss:$9 sm:$0xff] %v3804_v16  ;;  %v1643_v53 = vpop.permute.xlu1 %1642  ;;  %v3810_v16 = vld [vmem:[#allocation19_spill] sm:$0xff] }
 0x570   :  { %1622 = vst [vmem:[#allocation1 + $0x4] ss:$9 sm:$0xff] %v370_v8  ;;  %v1663_v32 = vadd.f32 %v1643_v53, %v384_v39  ;;  %v1668_v22 = vadd.f32 %v1660_v40, %v3629_v9  ;;  %v3620_v53 = vrot.slane %v3810_v16, 3  ;;  %v3812_v40 = vld [vmem:[#allocation11_spill] sm:$0xff] }
 0x571   :  { %1624 = vst [vmem:[#allocation1 + $0x5] ss:$9 sm:$0xff] %v372_v30 }
 0x572   :  { %1626 = vst [vmem:[#allocation1 + $0x6] ss:$9 sm:$0xff] %v3805_v34  ;;  %v1671_v30 = vadd.f32 %v1663_v32, %v3626_v42  ;;  %v3811_v34 = vld [vmem:[#allocation12_spill] sm:$0xff] }
 0x573   :  { %1628 = vst [vmem:[#allocation1 + $0x7] ss:$9 sm:$0xff] %v376_v13  ;;  %v3630_v13 = vrot.slane %v3808_v45, 2  ;;  %v3617_v32 = vrot.slane %v3811_v34, 3 }
 0x574   :  { %1638 = vrot.lane.b32.xlu2 %v380_v58, %s2370_s18 }
 0x577   :  { %v1649_v4 = vpop.permute.xlu1 %1648 }
 0x578   :  { %v1666_v63 = vadd.f32 %v1649_v4, %v390_v46  ;;  %v3807_v46 = vld [vmem:[#allocation45_spill] sm:$0xff]  ;;  %v3622_v4 = vrot.slane %v3812_v40, 3 }
 0x579   :  { %v3621_v8 = vrot.slane %v3807_v46, 3 }
 0x57a   :  { %v1629_v39 = vld [vmem:[#allocation1] sm:$0xff]  ;;  %v1674_v56 = vadd.f32 %v1666_v63, %v3625_v59  ;;  %v3609_v63 = vrot.slane %v2495_v21, 3 }
 0x57b   :  { %1684 = vst [vmem:[#allocation1] ss:$9 sm:$0xff] %v1668_v22  ;;  %1631 = vperm.xlu0 %2209, %v1629_v39   ;;  %v3610_v22 = vrot.slane %v2502_v23, 3  ;;  %v3611_v39 = vrot.slane %v2504_v24, 3 }
 0x57c   :  { %1690 = vst [vmem:[#allocation1 + $0x3] ss:$9 sm:$0xff] %v1671_v30  ;;  %1644 = vrot.lane.b32.xlu2 %v386_v15, %s2370_s18  ;;  %v3608_v30 = vrot.slane %v2493_v20, 3 }
 0x57d   :  { %1696 = vst [vmem:[#allocation1 + $0x6] ss:$9 sm:$0xff] %v1674_v56  ;;  %v3612_v56 = vrot.slane %v2514_v26, 3 }
 0x583   :  { %1640 = vrot.lane.b32.xlu0 %v3631_v60, %s2370_s18  ;;  %v3817_v60 = vld [vmem:[#allocation62_spill] sm:$0xff] }
 0x584   :  { %1650 = vrot.lane.b32.xlu2 %v392_v2, %s2370_s18 }
 0x58b   :  { %1646 = vrot.lane.b32.xlu0 %v3630_v13, %s2370_s18 }
 0x58c   :  { %1730 = vrot.lane.b32.xlu2 %v3621_v8, %s2370_s18 }
 0x593   :  { %1736 = vrot.lane.b32.xlu0 %v3616_v5, %s2370_s18  ;;  %v3623_v5 = vrot.slane %v3798_v44, 3 }
 0x594   :  { %1734 = vrot.lane.b32.xlu2 %v3620_v53, %s2370_s18 }
 0x59b   :  { %1742 = vrot.lane.b32.xlu0 %v3617_v32, %s2370_s18  ;;  %v3624_v32 = vrot.slane %v3796_v25, 3 }
 0x59c   :  { %1740 = vrot.lane.b32.xlu2 %v3622_v4, %s2370_s18  ;;  %v3628_v4 = vrot.slane %v3711_v50, 3 }
 0x5a3   :  { %1826 = vrot.lane.b32.xlu0 %v3608_v30, %s2370_s18  ;;  %v3613_v30 = vrot.slane %v3735_v17, 3 }
 0x5a4   :  { %1824 = vrot.lane.b32.xlu2 %v3609_v63, %s2370_s18  ;;  %v3614_v63 = vrot.slane %v3795_v28, 3 }
 0x5ab   :  { %1832 = vrot.lane.b32.xlu0 %v3610_v22, %s2370_s18  ;;  %v3615_v22 = vrot.slane %v3791_v54, 3 }
 0x5ac   :  { %1830 = vrot.lane.b32.xlu2 %v3611_v39, %s2370_s18  ;;  %v3618_v39 = vrot.slane %v3797_v18, 3 }
 0x5b3   :  { %1838 = vrot.lane.b32.xlu0 %v3612_v56, %s2370_s18  ;;  %v3619_v56 = vrot.slane %v3794_v14, 3 }
 0x5b4   :  { %1836 = vrot.lane.b32.xlu2 %v3613_v30, %s2370_s18  ;;  %v3202_v30 = vadd.s32 4294967216, %v2794_v61 }
 0x5b6   :  { %3813 = vst [vmem:[#allocation23_spill] sm:$0xff] %v3202_v30 }
 0x5bb   :  { %1922 = vrot.lane.b32.xlu0 %v3614_v63, %s2370_s18 }
 0x5bc   :  { %1920 = vrot.lane.b32.xlu2 %v3615_v22, %s2370_s18  ;;  %v3627_v22 = vrot.slane %v3799_v31, 3 }
 0x5c3   :  { %1928 = vrot.lane.b32.xlu0 %v3618_v39, %s2370_s18 }
 0x5c4   :  { %1926 = vrot.lane.b32.xlu2 %v3619_v56, %s2370_s18  ;;  %v396_v56 = vrot.slane %v3769_v7, 2 }
 0x5c6   :  { %v3207_v63 = vpop.permute.xlu2 %1607 }
 0x5c7   :  { %3814 = vst [vmem:[#allocation16_spill] sm:$0xff] %v3207_v63 }
 0x5cb   :  { %2012 = vrot.lane.b32.xlu0 %v3623_v5, %s2370_s18 }
 0x5cc   :  { %1932 = vrot.lane.b32.xlu2 %v3624_v32, %s2370_s18  ;;  %v3815_v32 = vld [vmem:[#allocation53_spill] sm:$0xff] }
 0x5cd   :  { %v402_v59 = vrot.slane %v3815_v32, 2  ;;  %v3821_v32 = vrot.slane %v3716_v49, 2 }
 0x5ce   :  { %v1639_v39 = vpop.permute.xlu2 %1638 }
 0x5cf   :  { %v1661_v53 = vadd.f32 %v1639_v39, %v380_v58  ;;  %v3632_v58 = vrot.slane %v3800_v10, 3 }
 0x5d1   :  { %v1669_v8 = vadd.f32 %v1661_v53, %v396_v56  ;;  %v3635_v53 = vrot.slane %v3808_v45, 3 }
 0x5d3   :  { %2018 = vrot.lane.b32.xlu0 %v3627_v22, %s2370_s18  ;;  %1686 = vst [vmem:[#allocation1 + $0x1] ss:$9 sm:$0xff] %v1669_v8  ;;  %v3816_v22 = vld [vmem:[#allocation56_spill] sm:$0xff] }
 0x5d4   :  { %2016 = vrot.lane.b32.xlu2 %v3628_v4, %s2370_s18  ;;  %v408_v4 = vrot.slane %v3816_v22, 2  ;;  %v3819_v22 = vld [vmem:[#allocation64_spill] sm:$0xff] }
 0x5d6   :  { %v1645_v5 = vpop.permute.xlu2 %1644 }
 0x5d7   :  { %v1664_v42 = vadd.f32 %v1645_v5, %v386_v15 }
 0x5d9   :  { %v1672_v39 = vadd.f32 %v1664_v42, %v402_v59 }
 0x5db   :  { %2024 = vrot.lane.b32.xlu0 %v3632_v58, %s2370_s18  ;;  %1692 = vst [vmem:[#allocation1 + $0x4] ss:$9 sm:$0xff] %v1672_v39  ;;  %v398_v58 = vrot.slane %v3817_v60, 2  ;;  %v3818_v39 = vrot.slane %v3711_v50, 2 }
 0x5dc   :  { %2022 = vrot.lane.b32.xlu2 %v3635_v53, %s2370_s18 }
 0x5de   :  { %v1651_v8 = vpop.permute.xlu2 %1650 }
 0x5df   :  { %v1667_v9 = vadd.f32 %v1651_v8, %v392_v2  ;;  %v404_v2 = vrot.slane %v3819_v22, 2 }
 0x5e1   :  { %v1675_v13 = vadd.f32 %v1667_v9, %v408_v4  ;;  %v3820_v9 = vrot.slane %v3808_v45, 2 }
 0x5e3   :  { %1698 = vst [vmem:[#allocation1 + $0x7] ss:$9 sm:$0xff] %v1675_v13 }
 0x5e6   :  { %v1731_v53 = vpop.permute.xlu2 %1730 }
 0x5ed   :  { %v1632_v15 = vpop.permute.xlu0 %1631 }
 0x5ee   :  { %v1633_v42 = vperm.slane %v1632_v15, %v3202_v30  ;;  %v1735_v15 = vpop.permute.xlu2 %1734 }
 0x5f0   :  { %1635 = vst.msk [vmem:[#allocation6] sm:$0x1] %vm1612_vm10, %v1633_v42 }
 0x5f5   :  { %v1641_v5 = vpop.permute.xlu0 %1640 }
 0x5f6   :  { %v1662_v63 = vadd.f32 %v1641_v5, %v3818_v39  ;;  %v3823_v5 = vrot.slane %v3720_v37, 2  ;;  %v3824_v39 = vrot.slane %v3812_v40, 3  ;;  %v3649_v37 = vrot.slane %v3777_v0, 3 }
 0x5f8   :  { %v1670_v29 = vadd.f32 %v1662_v63, %v398_v58  ;;  %v1741_v63 = vpop.permute.xlu2 %1740 }
 0x5fa   :  { %1688 = vst [vmem:[#allocation1 + $0x2] ss:$9 sm:$0xff] %v1670_v29  ;;  %v3822_v29 = vrot.slane %v3717_v57, 2 }
 0x5fd   :  { %v1647_v10 = vpop.permute.xlu0 %1646 }
 0x5fe   :  { %v1665_v13 = vadd.f32 %v1647_v10, %v3820_v9  ;;  %v1759_v9 = vadd.f32 %v1741_v63, %v3824_v39  ;;  %v412_v63 = vrot.slane %v3781_v52, 3  ;;  %v3830_v39 = vld [vmem:[#allocation21_spill] sm:$0xff] }
 0x600   :  { %v1673_v8 = vadd.f32 %v1665_v13, %v404_v2  ;;  %v3825_v13 = vrot.slane %v3807_v46, 3  ;;  %v3647_v46 = vrot.slane %v3779_v47, 3 }
 0x602   :  { %1694 = vst [vmem:[#allocation1 + $0x5] ss:$9 sm:$0xff] %v1673_v8  ;;  %v1754_v8 = vadd.f32 %v1731_v53, %v3825_v13  ;;  %v3831_v13 = vld [vmem:[#allocation20_spill] sm:$0xff] }
 0x605   :  { %v1737_v30 = vpop.permute.xlu0 %1736 }
 0x609   :  { %v3248_v42 = vld [vmem:[#allocation1] sm:$0xff] }
 0x60a   :  { %1708 = vst [vmem:[#allocation1] ss:$9 sm:$0xff] %v3821_v32  ;;  %v3826_v32 = vrot.slane %v3810_v16, 3 }
 0x60b   :  { %1710 = vst [vmem:[#allocation1 + $0x1] ss:$9 sm:$0xff] %v396_v56 }
 0x60c   :  { %1712 = vst [vmem:[#allocation1 + $0x2] ss:$9 sm:$0xff] %v398_v58  ;;  %v1756_v56 = vadd.f32 %v1735_v15, %v3826_v32  ;;  %v3648_v58 = vrot.slane %v3778_v27, 3  ;;  %v432_v15 = vrot.slane %v3780_v3, 3  ;;  %v3829_v3 = vld [vmem:[#allocation18_spill] sm:$0xff] }
 0x60d   :  { %1714 = vst [vmem:[#allocation1 + $0x3] ss:$9 sm:$0xff] %v3822_v29  ;;  %v1743_v10 = vpop.permute.xlu0 %1742  ;;  %v3650_v29 = vrot.slane %v2466_v11, 3  ;;  %v3832_v32 = vld [vmem:[#allocation22_spill] sm:$0xff] }
 0x60e   :  { %1716 = vst [vmem:[#allocation1 + $0x4] ss:$9 sm:$0xff] %v402_v59  ;;  %v3827_v59 = vrot.slane %v3811_v34, 3  ;;  %v1767_v40 = vadd.f32 %v1759_v9, %v3648_v58  ;;  %v1764_v34 = vadd.f32 %v1756_v56, %v3649_v37  ;;  %v424_v9 = vrot.slane %v3830_v39, 3  ;;  %v1825_v37 = vpop.permute.xlu2 %1824 }
 0x60f   :  { %1718 = vst [vmem:[#allocation1 + $0x5] ss:$9 sm:$0xff] %v404_v2  ;;  %v1762_v16 = vadd.f32 %v1754_v8, %v3650_v29  ;;  %v3645_v8 = vrot.slane %v3831_v13, 3  ;;  %v3646_v52 = vrot.slane %v3832_v32, 3  ;;  %v3643_v56 = vrot.slane %v2550_v35, 3 }
 0x610   :  { %1720 = vst [vmem:[#allocation1 + $0x6] ss:$9 sm:$0xff] %v3823_v5  ;;  %v1760_v2 = vadd.f32 %v1743_v10, %v3827_v59  ;;  %v3828_v5 = vrot.slane %v3809_v1, 3  ;;  %v418_v10 = vrot.slane %v3829_v3, 3  ;;  %v3642_v59 = vrot.slane %v2562_v38, 3 }
 0x611   :  { %1722 = vst [vmem:[#allocation1 + $0x7] ss:$9 sm:$0xff] %v408_v4 }
 0x612   :  { %v1757_v4 = vadd.f32 %v1737_v30, %v3828_v5  ;;  %v1768_v1 = vadd.f32 %v1760_v2, %v3647_v46  ;;  %v3641_v2 = vrot.slane %v2574_v41, 3  ;;  %v3640_v5 = vrot.slane %v3761_v36, 3 }
 0x614   :  { %v1765_v30 = vadd.f32 %v1757_v4, %v432_v15  ;;  %v3639_v4 = vrot.slane %v3763_v6, 3 }
 0x615   :  { %v1827_v29 = vpop.permute.xlu0 %1826 }
 0x618   :  { %v1723_v53 = vld [vmem:[#allocation1] sm:$0xff] }
 0x619   :  { %1788 = vst [vmem:[#allocation1 + $0x5] ss:$9 sm:$0xff] %v1767_v40  ;;  %1725 = vperm.xlu1 %2221, %v1723_v53   ;;  %v3644_v40 = vrot.slane %v3806_v48, 3 }
 0x61a   :  { %1778 = vst [vmem:[#allocation1] ss:$9 sm:$0xff] %v1762_v16  ;;  %v3319_v16 = vadd.s32 4294967208, %v2794_v61 }
 0x61b   :  { %1782 = vst [vmem:[#allocation1 + $0x2] ss:$9 sm:$0xff] %v1764_v34 }
 0x61c   :  { %1784 = vst [vmem:[#allocation1 + $0x3] ss:$9 sm:$0xff] %v1765_v30  ;;  %v3834_v30 = vld [vmem:[#allocation13_spill] sm:$0xff] }
 0x61d   :  { %1790 = vst [vmem:[#allocation1 + $0x6] ss:$9 sm:$0xff] %v1768_v1  ;;  %v428_v3 = vrot.slane %v3834_v30, 3 }
 0x61e   :  { %3833 = vst [vmem:[#allocation30_spill] sm:$0xff] %v3319_v16 }
 0x621   :  { %1732 = vrot.lane.b32.xlu1 %v412_v63, %s2370_s18 }
 0x622   :  { %2223 = vset.pattern.permute.xlu1 %v3707_v43 }
 0x629   :  { %1738 = vrot.lane.b32.xlu1 %v418_v10, %s2370_s18 }
 0x631   :  { %1744 = vrot.lane.b32.xlu1 %v424_v9, %s2370_s18 }
 0x639   :  { %1828 = vrot.lane.b32.xlu1 %v3645_v8, %s2370_s18 }
 0x641   :  { %1834 = vrot.lane.b32.xlu1 %v3646_v52, %s2370_s18  ;;  %v3836_v52 = vld [vmem:[#allocation17_spill] sm:$0xff] }
 0x642   :  { %v440_v46 = vrot.slane %v3836_v52, 3 }
 0x649   :  { %1918 = vrot.lane.b32.xlu1 %v3643_v56, %s2370_s18 }
 0x651   :  { %1924 = vrot.lane.b32.xlu1 %v3642_v59, %s2370_s18 }
 0x659   :  { %1930 = vrot.lane.b32.xlu1 %v3641_v2, %s2370_s18  ;;  %v3835_v2 = vld [vmem:[#allocation14_spill] sm:$0xff] }
 0x65a   :  { %v434_v59 = vrot.slane %v3835_v2, 3 }
 0x661   :  { %2014 = vrot.lane.b32.xlu1 %v3640_v5, %s2370_s18 }
 0x669   :  { %2020 = vrot.lane.b32.xlu1 %v3639_v4, %s2370_s18 }
 0x671   :  { %2026 = vrot.lane.b32.xlu1 %v3644_v40, %s2370_s18 }
 0x68b   :  { %v1726_v53 = vpop.permute.xlu1 %1725 }
 0x68c   :  { %v1727_v34 = vperm.slane %v1726_v53, %v3319_v16  ;;  %v1831_v16 = vpop.permute.xlu2 %1830 }
 0x68e   :  { %1729 = vst.msk [vmem:[#allocation6] sm:$0x1] %vm1706_vm11, %v1727_v34 }
 0x693   :  { %v1733_v1 = vpop.permute.xlu1 %1732 }
 0x694   :  { %v1755_v39 = vadd.f32 %v1733_v1, %v412_v63  ;;  %v3837_v63 = vrot.slane %v2466_v11, 3  ;;  %v3842_v11 = vrot.slane %v2495_v21, 3 }
 0x696   :  { %v1763_v4 = vadd.f32 %v1755_v39, %v428_v3  ;;  %v1848_v52 = vadd.f32 %v1825_v37, %v3842_v11  ;;  %v3849_v37 = vrot.slane %v3735_v17, 3 }
 0x698   :  { %1780 = vst [vmem:[#allocation1 + $0x1] ss:$9 sm:$0xff] %v1763_v4  ;;  %v1833_v4 = vpop.permute.xlu0 %1832 }
 0x69b   :  { %v1739_v5 = vpop.permute.xlu1 %1738 }
 0x69c   :  { %v1758_v56 = vadd.f32 %v1739_v5, %v418_v10  ;;  %v3838_v10 = vrot.slane %v3777_v0, 3  ;;  %v3843_v5 = vrot.slane %v2493_v20, 3  ;;  %v3844_v0 = vld [vmem:[#allocation25_spill] sm:$0xff] }
 0x69d   :  { %v458_v1 = vrot.slane %v3844_v0, 3  ;;  %v3853_v0 = vld [vmem:[#allocation29_spill] sm:$0xff] }
 0x69e   :  { %v1766_v40 = vadd.f32 %v1758_v56, %v434_v59  ;;  %v1837_v56 = vpop.permute.xlu2 %1836 }
 0x6a0   :  { %1786 = vst [vmem:[#allocation1 + $0x4] ss:$9 sm:$0xff] %v1766_v40  ;;  %v1849_v40 = vadd.f32 %v1827_v29, %v3843_v5  ;;  %v3850_v29 = vld [vmem:[#allocation37_spill] sm:$0xff] }
 0x6a3   :  { %v1745_v8 = vpop.permute.xlu1 %1744 }
 0x6a4   :  { %v1761_v58 = vadd.f32 %v1745_v8, %v424_v9  ;;  %v3839_v9 = vrot.slane %v3778_v27, 3  ;;  %v3841_v8 = vmov 1   ;;  %v1839_v27 = vpop.permute.xlu0 %1838 }
 0x6a6   :  { %v1769_v53 = vadd.f32 %v1761_v58, %v440_v46  ;;  %v3840_v58 = vrot.slane %v3779_v47, 3 }
 0x6a8   :  { %1792 = vst [vmem:[#allocation1 + $0x7] ss:$9 sm:$0xff] %v1769_v53  ;;  %v1856_v53 = vadd.f32 %v1848_v52, %v458_v1 }
 0x6ab   :  { %v1829_v2 = vpop.permute.xlu1 %1828 }
 0x6af   :  { %v1793_v34 = vld [vmem:[#allocation1] sm:$0xff] }
 0x6b0   :  { %1802 = vst [vmem:[#allocation1] ss:$9 sm:$0xff] %v3837_v63  ;;  %1795 = vperm.xlu2 %2220, %v1793_v34   ;;  %v3848_v34 = vld [vmem:[#allocation28_spill] sm:$0xff]  ;;  %v1854_v63 = vadd.f32 %v1837_v56, %v3849_v37  ;;  %v3855_v56 = vld [vmem:[#allocation39_spill] sm:$0xff] }
 0x6b1   :  { %1804 = vst [vmem:[#allocation1 + $0x1] ss:$9 sm:$0xff] %v428_v3  ;;  %v3846_v3 = vld [vmem:[#allocation34_spill] sm:$0xff]  ;;  %v464_v21 = vrot.slane %v3848_v34, 3  ;;  %v1923_v34 = vpop.permute.xlu0 %1922 }
 0x6b2   :  { %1806 = vst [vmem:[#allocation1 + $0x2] ss:$9 sm:$0xff] %v3838_v10  ;;  %v460_v47 = vrot.slane %v3846_v3, 3  ;;  %v466_v10 = vrot.slane %v3850_v29, 3  ;;  %v3860_v29 = vrot.slane %v2550_v35, 3  ;;  %v496_v35 = vrot.slane %v3792_v12, 3 }
 0x6b3   :  { %1808 = vst [vmem:[#allocation1 + $0x3] ss:$9 sm:$0xff] %v432_v15  ;;  %v3845_v15 = vrot.slane %v2504_v24, 3  ;;  %v1835_v30 = vpop.permute.xlu1 %1834 }
 0x6b4   :  { %1810 = vst [vmem:[#allocation1 + $0x4] ss:$9 sm:$0xff] %v434_v59  ;;  %v1857_v20 = vadd.f32 %v1849_v40, %v460_v47  ;;  %v472_v40 = vrot.slane %v3855_v56, 3 }
 0x6b5   :  { %1812 = vst [vmem:[#allocation1 + $0x5] ss:$9 sm:$0xff] %v3839_v9  ;;  %v1851_v59 = vadd.f32 %v1831_v16, %v3845_v15  ;;  %v3851_v9 = vrot.slane %v2514_v26, 3  ;;  %v3856_v15 = vld [vmem:[#allocation36_spill] sm:$0xff] }
 0x6b6   :  { %1814 = vst [vmem:[#allocation1 + $0x6] ss:$9 sm:$0xff] %v3840_v58  ;;  %v3852_v58 = vrot.slane %v3832_v32, 3  ;;  %v468_v3 = vrot.slane %v3856_v15, 3 }
 0x6b7   :  { %1816 = vst [vmem:[#allocation1 + $0x7] ss:$9 sm:$0xff] %v440_v46  ;;  %v3847_v46 = vrot.slane %v2502_v23, 3  ;;  %v1855_v24 = vadd.f32 %v1839_v27, %v3851_v9  ;;  %v1859_v5 = vadd.f32 %v1851_v59, %v464_v21  ;;  %v470_v23 = vrot.slane %v3853_v0, 3  ;;  %v3857_v27 = vld [vmem:[#allocation33_spill] sm:$0xff] }
 0x6b8   :  { %2224 = vset.pattern.permute.xlu2 %v3841_v8  ;;  %v1853_v11 = vadd.f32 %v1835_v30, %v3852_v58  ;;  %v3861_v9 = vrot.slane %v3791_v54, 3  ;;  %v492_v0 = vrot.slane %v3756_v51, 3  ;;  %v3865_v54 = vrot.slane %v3794_v14, 3 }
 0x6b9   :  { %v1852_v39 = vadd.f32 %v1833_v4, %v3847_v46  ;;  %v3854_v4 = vrot.slane %v3831_v13, 3  ;;  %v1862_v26 = vadd.f32 %v1854_v63, %v470_v23  ;;  %v462_v46 = vrot.slane %v3857_v27, 3 }
 0x6ba   :  { %v1863_v32 = vadd.f32 %v1855_v24, %v472_v40  ;;  %v1861_v59 = vadd.f32 %v1853_v11, %v468_v3  ;;  %v1929_v11 = vpop.permute.xlu0 %1928  ;;  %v498_v51 = vrot.slane %v3757_v62, 3  ;;  %v3869_v27 = vrot.slane %v3796_v25, 3 }
 0x6bb   :  { %v1850_v52 = vadd.f32 %v1829_v2, %v3854_v4  ;;  %v1860_v17 = vadd.f32 %v1852_v39, %v466_v10  ;;  %v1919_v13 = vpop.permute.xlu1 %1918  ;;  %v1921_v2 = vpop.permute.xlu2 %1920  ;;  %v3858_v39 = vld [vmem:[#allocation54_spill] sm:$0xff]  ;;  %v500_v14 = vrot.slane %v3803_v19, 3 }
 0x6bc   :  { %v1943_v24 = vadd.f32 %v1921_v2, %v3861_v9  ;;  %v3873_v9 = vrot.slane %v3763_v6, 3 }
 0x6bd   :  { %v1858_v30 = vadd.f32 %v1850_v52, %v462_v46  ;;  %v3866_v52 = vld [vmem:[#allocation38_spill] sm:$0xff] }
 0x6be   :  { %v1817_v16 = vld [vmem:[#allocation1] sm:$0xff]  ;;  %v1951_v56 = vadd.f32 %v1943_v24, %v492_v0 }
 0x6bf   :  { %1872 = vst [vmem:[#allocation1] ss:$9 sm:$0xff] %v1856_v53  ;;  %1819 = vperm.xlu0 %2209, %v1817_v16  }
 0x6c0   :  { %1874 = vst [vmem:[#allocation1 + $0x1] ss:$9 sm:$0xff] %v1857_v20  ;;  %v3859_v20 = vld [vmem:[#allocation55_spill] sm:$0xff] }
 0x6c1   :  { %1878 = vst [vmem:[#allocation1 + $0x3] ss:$9 sm:$0xff] %v1859_v5 }
 0x6c2   :  { %1880 = vst [vmem:[#allocation1 + $0x4] ss:$9 sm:$0xff] %v1860_v17  ;;  %v2013_v25 = vpop.permute.xlu0 %2012 }
 0x6c3   :  { %1884 = vst [vmem:[#allocation1 + $0x6] ss:$9 sm:$0xff] %v1862_v26  ;;  %v1925_v37 = vpop.permute.xlu1 %1924  ;;  %v1927_v63 = vpop.permute.xlu2 %1926 }
 0x6c4   :  { %1886 = vst [vmem:[#allocation1 + $0x7] ss:$9 sm:$0xff] %v1863_v32  ;;  %v1946_v4 = vadd.f32 %v1927_v63, %v3865_v54  ;;  %v502_v32 = vrot.slane %v3793_v33, 3  ;;  %v3872_v63 = vrot.slane %v3711_v50, 3  ;;  %v3876_v50 = vrot.slane %v3808_v45, 3  ;;  %v3878_v54 = vld [vmem:[#allocation47_spill] sm:$0xff] }
 0x6c5   :  { %1876 = vst [vmem:[#allocation1 + $0x2] ss:$9 sm:$0xff] %v1858_v30  ;;  %v3880_v45 = vld [vmem:[#allocation56_spill] sm:$0xff] }
 0x6c6   :  { %1882 = vst [vmem:[#allocation1 + $0x5] ss:$9 sm:$0xff] %v1861_v59  ;;  %v504_v59 = vrot.slane %v3758_v55, 3  ;;  %v3870_v55 = vrot.slane %v3798_v44, 3  ;;  %v524_v44 = vrot.slane %v3769_v7, 3 }
 0x6c7   :  { %2222 = vset.pattern.permute.xlu0 %v3707_v43  ;;  %v1942_v43 = vadd.f32 %v1919_v13, %v3860_v29 }
 0x6c8   :  { %949 = vperm.xlu0 %2222, %v3858_v39  }
 0x6ca   :  { %v2019_v39 = vpop.permute.xlu0 %2018 }
 0x6cb   :  { %v1931_v5 = vpop.permute.xlu1 %1930 }
 0x6cd   :  { %v1887_v53 = vld [vmem:[#allocation1] sm:$0xff] }
 0x6ce   :  { %1889 = vperm.xlu1 %2223, %v1887_v53   ;;  %1896 = vst [vmem:[#allocation1] ss:$9 sm:$0xff] %v458_v1  ;;  %v3862_v1 = vrot.slane %v2562_v38, 3  ;;  %v494_v38 = vrot.slane %v3866_v52, 3  ;;  %v2036_v53 = vadd.f32 %v2013_v25, %v3870_v55  ;;  %v3889_v25 = vld [vmem:[#allocation51_spill] sm:$0xff] }
 0x6cf   :  { %1898 = vst [vmem:[#allocation1 + $0x1] ss:$9 sm:$0xff] %v460_v47  ;;  %v3863_v47 = vrot.slane %v3795_v28, 3 }
 0x6d0   :  { %1900 = vst [vmem:[#allocation1 + $0x2] ss:$9 sm:$0xff] %v462_v46  ;;  %1325 = vperm.xlu0 %2222, %v3859_v20   ;;  %v1945_v16 = vadd.f32 %v1925_v37, %v3862_v1 }
 0x6d1   :  { %1902 = vst [vmem:[#allocation1 + $0x3] ss:$9 sm:$0xff] %v464_v21  ;;  %v1944_v58 = vadd.f32 %v1923_v34, %v3863_v47  ;;  %v3864_v21 = vld [vmem:[#allocation46_spill] sm:$0xff]  ;;  %v3871_v34 = vrot.slane %v3761_v36, 3 }
 0x6d2   :  { %1904 = vst [vmem:[#allocation1 + $0x4] ss:$9 sm:$0xff] %v466_v10  ;;  %v490_v10 = vrot.slane %v3864_v21, 3  ;;  %v3875_v21 = vld [vmem:[#allocation53_spill] sm:$0xff] }
 0x6d3   :  { %1906 = vst [vmem:[#allocation1 + $0x5] ss:$9 sm:$0xff] %v468_v3  ;;  %v3868_v3 = vrot.slane %v2574_v41, 3  ;;  %v1952_v46 = vadd.f32 %v1944_v58, %v494_v38  ;;  %v2015_v62 = vpop.permute.xlu1 %2014  ;;  %v2025_v58 = vpop.permute.xlu0 %2024 }
 0x6d4   :  { %1908 = vst [vmem:[#allocation1 + $0x6] ss:$9 sm:$0xff] %v470_v23  ;;  %v1933_v23 = vpop.permute.xlu2 %1932  ;;  %v1950_v17 = vadd.f32 %v1942_v43, %v490_v10  ;;  %v2037_v37 = vadd.f32 %v2015_v62, %v3871_v34  ;;  %v522_v43 = vrot.slane %v3716_v49, 3  ;;  %v528_v49 = vrot.slane %v3717_v57, 3  ;;  %v3894_v34 = vld [vmem:[#allocation50_spill] sm:$0xff] }
 0x6d5   :  { %1910 = vst [vmem:[#allocation1 + $0x7] ss:$9 sm:$0xff] %v472_v40  ;;  %v1953_v40 = vadd.f32 %v1945_v16, %v496_v35  ;;  %v1948_v26 = vadd.f32 %v1931_v5, %v3868_v3  ;;  %v1949_v12 = vadd.f32 %v1933_v23, %v3869_v27  ;;  %v3874_v16 = vrot.slane %v3799_v31, 3 }
 0x6d6   :  { %v2044_v36 = vadd.f32 %v2036_v53, %v522_v43  ;;  %v3877_v23 = vrot.slane %v3806_v48, 3  ;;  %v1797_v3 = vadd.s32 4294967200, %v2794_v61  ;;  %v1891_v27 = vadd.s32 4294967192, %v2794_v61  ;;  %v3893_v53 = vld [vmem:[#allocation24_spill] sm:$0xff] }
 0x6d7   :  { %v1956_v41 = vadd.f32 %v1948_v26, %v502_v32  ;;  %v1957_v13 = vadd.f32 %v1949_v12, %v504_v59  ;;  %v2039_v47 = vadd.f32 %v2019_v39, %v3874_v16  ;;  %v3892_v39 = vld [vmem:[#allocation58_spill] sm:$0xff] }
 0x6d8   :  { %1701 = vperm.xlu0 %2222, %v3248_v42   ;;  %v3867_v42 = vrot.slane %v3797_v18, 3  ;;  %v1954_v18 = vadd.f32 %v1946_v4, %v498_v51  ;;  %v3879_v4 = vrot.slane %v3878_v54, 3 }
 0x6da   :  { %v1947_v28 = vadd.f32 %v1929_v11, %v3867_v42  ;;  %v526_v11 = vrot.slane %v3817_v60, 3  ;;  %v2042_v52 = vadd.f32 %v2025_v58, %v3879_v4  ;;  %v532_v60 = vrot.slane %v3819_v22, 3 }
 0x6db   :  { %v2021_v33 = vpop.permute.xlu1 %2020 }
 0x6dc   :  { %v1911_v15 = vld [vmem:[#allocation1] sm:$0xff]  ;;  %v1955_v30 = vadd.f32 %v1947_v28, %v500_v14  ;;  %v2017_v19 = vpop.permute.xlu2 %2016  ;;  %v2040_v24 = vadd.f32 %v2021_v33, %v3873_v9  ;;  %v3900_v9 = vld [vmem:[#allocation23_spill] sm:$0xff] }
 0x6dd   :  { %1913 = vperm.xlu2 %2224, %v1911_v15   ;;  %1966 = vst [vmem:[#allocation1] ss:$9 sm:$0xff] %v1950_v17  ;;  %v2038_v20 = vadd.f32 %v2017_v19, %v3872_v63  ;;  %v536_v17 = vrot.slane %v3880_v45, 3  ;;  %v3896_v63 = vld [vmem:[#allocation26_spill] sm:$0xff] }
 0x6de   :  { %1968 = vst [vmem:[#allocation1 + $0x1] ss:$9 sm:$0xff] %v1951_v56  ;;  %v3881_v56 = vld [vmem:[#allocation63_spill] sm:$0xff] }
 0x6df   :  { %1970 = vst [vmem:[#allocation1 + $0x2] ss:$9 sm:$0xff] %v1952_v46  ;;  %v2046_v31 = vadd.f32 %v2038_v20, %v526_v11  ;;  %v534_v57 = vrot.slane %v3881_v56, 3  ;;  %v3897_v20 = vld [vmem:[#allocation27_spill] sm:$0xff] }
 0x6e0   :  { %1972 = vst [vmem:[#allocation1 + $0x3] ss:$9 sm:$0xff] %v1953_v40 }
 0x6e1   :  { %1974 = vst [vmem:[#allocation1 + $0x4] ss:$9 sm:$0xff] %v1954_v18  ;;  %v2050_v28 = vadd.f32 %v2042_v52, %v534_v57  ;;  %v3883_v18 = vld [vmem:[#allocation31_spill] sm:$0xff] }
 0x6e2   :  { %1976 = vst [vmem:[#allocation1 + $0x5] ss:$9 sm:$0xff] %v1955_v30 }
 0x6e3   :  { %1980 = vst [vmem:[#allocation1 + $0x7] ss:$9 sm:$0xff] %v1957_v13  ;;  %v2027_v1 = vpop.permute.xlu1 %2026  ;;  %v3887_v13 = vld [vmem:[#allocation65_spill] sm:$0xff] }
 0x6e4   :  { %1978 = vst [vmem:[#allocation1 + $0x6] ss:$9 sm:$0xff] %v1956_v41  ;;  %v2023_v29 = vpop.permute.xlu2 %2022  ;;  %v3886_v41 = vld [vmem:[#allocation66_spill] sm:$0xff] }
 0x6e5   :  { %v2041_v5 = vadd.f32 %v2023_v29, %v3876_v50  ;;  %v3888_v62 = vperm.slane %v3886_v41, %v3887_v13  ;;  %v3898_v29 = vperm.slane %v3896_v63, %v3897_v20 }
 0x6e7   :  { %v2049_v42 = vadd.f32 %v2041_v5, %v532_v60 }
 0x6eb   :  { %v1981_v2 = vld [vmem:[#allocation1] sm:$0xff] }
 0x6ec   :  { %1983 = vperm.xlu1 %2223, %v1981_v2   ;;  %1990 = vst [vmem:[#allocation1] ss:$9 sm:$0xff] %v490_v10  ;;  %v530_v10 = vrot.slane %v3875_v21, 3  ;;  %v3890_v2 = vld [vmem:[#allocation48_spill] sm:$0xff] }
 0x6ed   :  { %1992 = vst [vmem:[#allocation1 + $0x1] ss:$9 sm:$0xff] %v492_v0  ;;  %v2045_v0 = vadd.f32 %v2037_v37, %v524_v44  ;;  %v3891_v19 = vperm.slane %v3889_v25, %v3890_v2  ;;  %v3895_v37 = vperm.slane %v3893_v53, %v3894_v34 }
 0x6ee   :  { %1994 = vst [vmem:[#allocation1 + $0x2] ss:$9 sm:$0xff] %v494_v38  ;;  %v2048_v7 = vadd.f32 %v2040_v24, %v530_v10  ;;  %v2047_v38 = vadd.f32 %v2039_v47, %v528_v49  ;;  %v3902_v47 = vld [vmem:[#allocation30_spill] sm:$0xff] }
 0x6ef   :  { %1996 = vst [vmem:[#allocation1 + $0x3] ss:$9 sm:$0xff] %v496_v35  ;;  %v2043_v35 = vadd.f32 %v2027_v1, %v3877_v23 }
 0x6f0   :  { %1998 = vst [vmem:[#allocation1 + $0x4] ss:$9 sm:$0xff] %v498_v51 }
 0x6f1   :  { %2000 = vst [vmem:[#allocation1 + $0x5] ss:$9 sm:$0xff] %v500_v14  ;;  %v2051_v48 = vadd.f32 %v2043_v35, %v536_v17 }
 0x6f2   :  { %2002 = vst [vmem:[#allocation1 + $0x6] ss:$9 sm:$0xff] %v502_v32  ;;  %v3882_v32 = vld [vmem:[#allocation59_spill] sm:$0xff] }
 0x6f3   :  { %2004 = vst [vmem:[#allocation1 + $0x7] ss:$9 sm:$0xff] %v504_v59  ;;  %v3884_v59 = vld [vmem:[#allocation61_spill] sm:$0xff] }
 0x6f4   :  { %2225 = vset.pattern.permute.xlu1 %v3841_v8  ;;  %v3885_v30 = vperm.slane %v3883_v18, %v3884_v59 }
 0x6fa   :  { %v2005_v6 = vld [vmem:[#allocation1] sm:$0xff] }
 0x6fb   :  { %2007 = vperm.xlu2 %2224, %v2005_v6   ;;  %2060 = vst [vmem:[#allocation1] ss:$9 sm:$0xff] %v2044_v36  ;;  %v1985_v36 = vadd.s32 4294967184, %v2794_v61 }
 0x6fc   :  { %2062 = vst [vmem:[#allocation1 + $0x1] ss:$9 sm:$0xff] %v2045_v0 }
 0x6fd   :  { %2064 = vst [vmem:[#allocation1 + $0x2] ss:$9 sm:$0xff] %v2046_v31 }
 0x6fe   :  { %2066 = vst [vmem:[#allocation1 + $0x3] ss:$9 sm:$0xff] %v2047_v38 }
 0x6ff   :  { %2068 = vst [vmem:[#allocation1 + $0x4] ss:$9 sm:$0xff] %v2048_v7 }
 0x700   :  { %2070 = vst [vmem:[#allocation1 + $0x5] ss:$9 sm:$0xff] %v2049_v42 }
 0x701   :  { %2072 = vst [vmem:[#allocation1 + $0x6] ss:$9 sm:$0xff] %v2050_v28 }
 0x702   :  { %2074 = vst [vmem:[#allocation1 + $0x7] ss:$9 sm:$0xff] %v2051_v48 }
 0x709   :  { %v2075_v40 = vld [vmem:[#allocation1] sm:$0xff] }
 0x70a   :  { %2077 = vperm.xlu0 %2222, %v2075_v40   ;;  %2084 = vst [vmem:[#allocation1] ss:$9 sm:$0xff] %v522_v43  ;;  %v1796_v15 = vpop.permute.xlu2 %1795  ;;  %v3899_v43 = vld [vmem:[#allocation16_spill] sm:$0xff] }
 0x70b   :  { %2086 = vst [vmem:[#allocation1 + $0x1] ss:$9 sm:$0xff] %v524_v44  ;;  %v3901_v24 = vperm.slane %v3899_v43, %v3900_v9  ;;  %v1798_v44 = vperm.slane %v1796_v15, %v1797_v3 }
 0x70c   :  { %2088 = vst [vmem:[#allocation1 + $0x2] ss:$9 sm:$0xff] %v526_v11 }
 0x70d   :  { %2090 = vst [vmem:[#allocation1 + $0x3] ss:$9 sm:$0xff] %v528_v49  ;;  %v2079_v49 = vadd.s32 4294967176, %v2794_v61 }
 0x70e   :  { %2092 = vst [vmem:[#allocation1 + $0x4] ss:$9 sm:$0xff] %v530_v10 }
 0x70f   :  { %2094 = vst [vmem:[#allocation1 + $0x5] ss:$9 sm:$0xff] %v532_v60 }
 0x710   :  { %2096 = vst [vmem:[#allocation1 + $0x6] ss:$9 sm:$0xff] %v534_v57 }
 0x711   :  { %2098 = vst [vmem:[#allocation1 + $0x7] ss:$9 sm:$0xff] %v536_v17 }
 0x712   :  { %2226 = vset.pattern.permute.xlu0 %v3841_v8 }
 0x718   :  { %v2099_v22 = vld [vmem:[#allocation1] sm:$0xff] }
 0x719   :  { %2101 = vperm.xlu1 %2225, %v2099_v22  }
 0x731   :  { %v1820_v26 = vpop.permute.xlu0 %1819 }
 0x732   :  { %v1821_v51 = vperm.slane %v1820_v26, %v1797_v3 }
 0x734   :  { %1823 = vst.msk [vmem:[#allocation6] sm:$0x1] %vm1800_vm12, %v1821_v51 }
 0x737   :  { %v1914_v12 = vpop.permute.xlu2 %1913 }
 0x738   :  { %v1915_v46 = vperm.slane %v1914_v12, %v1891_v27 }
 0x73a   :  { %v950_v14 = vpop.permute.xlu0 %949  ;;  %1917 = vst.msk [vmem:[#allocation6] sm:$0x1] %vm1894_vm13, %v1915_v46 }
 0x73b   :  { %v952_v8 = vperm.slane %v950_v14, %v3882_v32 }
 0x73d   :  { %955 = vst.msk [vmem:[#allocation5] sm:$0x1] %vm954_vm3, %v952_v8 }
 0x73e   :  { %1049 = vst.msk [vmem:[#allocation5] sm:$0x1] %vm1048_vm4, %v3885_v30 }
 0x73f   :  { %1143 = vst.msk [vmem:[#allocation5] sm:$0x1] %vm1142_vm5, %v3888_v62 }
 0x740   :  { %1237 = vst.msk [vmem:[#allocation5] sm:$0x1] %vm1236_vm6, %v3891_v19  ;;  %v1890_v1 = vpop.permute.xlu1 %1889 }
 0x741   :  { %v1892_v11 = vperm.slane %v1890_v1, %v1891_v27 }
 0x742   :  { %v1326_v33 = vpop.permute.xlu0 %1325 }
 0x743   :  { %v1328_v55 = vperm.slane %v1326_v33, %v3892_v39 }
 0x745   :  { %1331 = vst.msk [vmem:[#allocation5] sm:$0x1] %vm1330_vm7, %v1328_v55 }
 0x746   :  { %1425 = vst.msk [vmem:[#allocation5] sm:$0x1] %vm1424_vm8, %v3895_v37 }
 0x747   :  { %1519 = vst.msk [vmem:[#allocation5] sm:$0x1] %vm1518_vm9, %v3898_v29 }
 0x748   :  { %1613 = vst.msk [vmem:[#allocation5] sm:$0x1] %vm1612_vm10, %v3901_v24 }
 0x74a   :  { %v1702_v16 = vpop.permute.xlu0 %1701 }
 0x74b   :  { %v1704_v58 = vperm.slane %v1702_v16, %v3902_v47 }
 0x74d   :  { %1707 = vst.msk [vmem:[#allocation5] sm:$0x1] %vm1706_vm11, %v1704_v58 }
 0x74e   :  { %1801 = vst.msk [vmem:[#allocation5] sm:$0x1] %vm1800_vm12, %v1798_v44 }
 0x74f   :  { %1895 = vst.msk [vmem:[#allocation5] sm:$0x1] %vm1894_vm13, %v1892_v11 }
 0x755   :  { %v2008_v21 = vpop.permute.xlu2 %2007 }
 0x756   :  { %v2009_v10 = vperm.slane %v2008_v21, %v1985_v36 }
 0x758   :  { %2011 = vst.msk [vmem:[#allocation6] sm:$0x1] %vm1988_vm14, %v2009_v10 }
 0x75e   :  { %v1984_v50 = vpop.permute.xlu1 %1983 }
 0x75f   :  { %v1986_v5 = vperm.slane %v1984_v50, %v1985_v36 }
 0x761   :  { %1989 = vst.msk [vmem:[#allocation5] sm:$0x1] %vm1988_vm14, %v1986_v5 }
 0x77c   :  { %v2078_v0 = vpop.permute.xlu0 %2077 }
 0x77d   :  { %v2080_v6 = vperm.slane %v2078_v0, %v2079_v49 }
 0x77f   :  { %2083 = vst.msk [vmem:[#allocation5] sm:$0x1] %vm2082_vm15, %v2080_v6 }
 0x780   :  { %2116 = dma.vmem_to_hbm [thread:$0]  %s2112_s20, 16, %s2114_s23, [#allocation4]  }
 0x78b   :  { %v2102_v61 = vpop.permute.xlu1 %2101 }
 0x78c   :  { %v2103_v23 = vperm.slane %v2102_v61, %v2079_v49 }
 0x78e   :  { %2105 = vst.msk [vmem:[#allocation6] sm:$0x1] %vm2082_vm15, %v2103_v23 }
 0x78f   :  { %2127 = dma.vmem_to_hbm [thread:$0]  %s2123_s25, 16, %s2125_s28, [#allocation7]  }
 0x790   :  { %2302 = dma.done.wait [#allocation4], 16  }
 0x791   :  { %2303 = vsyncadd [#allocation4], 4294967280 }
 0x792   :  { %2304 = dma.done.wait [#allocation7], 16  }
 0x793   :  { %2305 = vsyncadd [#allocation7], 4294967280 }
 0x794   :  { %2136 = vsyncpa [#allocation3], 1 }
 0x795   :  { %2137 = vsyncpa [#allocation4], 1 }
 0x796   :  { %2138 = vsyncpa [#allocation7], 1 }

</bundles_post_ra>
